<compile_context>
chip_gen: v7x
topology: tpu7x:2x2x1
jax: 0.10.0
libtpu: 0.0.40
codegen_flags: <defaults>
</compile_context>

<pallas_src>
import functools
import math

import jax
import jax.numpy as jnp
from jax import lax
from jax.experimental import pallas as pl
from jax.experimental.pallas import tpu as pltpu


def _layer_norm(x, gamma, beta, eps):
    """One-pass LayerNorm: var = E[x^2] - mu^2 (one pair of cross-lane reductions)."""
    inv_n = 1.0 / x.shape[-1]
    s1 = jnp.sum(x, axis=-1, keepdims=True)
    s2 = jnp.sum(x * x, axis=-1, keepdims=True)
    mu = s1 * inv_n
    var = jnp.maximum(s2 * inv_n - mu * mu, 0.0)
    return (x - mu) * lax.rsqrt(var + eps) * gamma + beta


def _gelu(x):
    # exact (erf) gelu, matching RecBole's FeedForward for hidden_act="gelu"
    # TODO(synk): tanh-approx gelu would move this to the EUP slot but changes
    #             numerics vs. the erf-based PyTorch reference.
    return 0.5 * x * (1.0 + lax.erf(x * (1.0 / math.sqrt(2.0))))


def transformer_layer_kernel(x_ref, mask_ref, wqkv_ref, bqkv_ref, wo_ref,
                             bo_ref, g1_ref, be1_ref,
                             w1_ref, b1_ref, w2_ref, b2_ref, g2_ref, be2_ref,
                             out_ref, acc_ref, *, eps):
    h = pl.program_id(1)
    n_heads = pl.num_programs(1)
    bt, s_len, hidden = x_ref.shape

    x = x_ref[...].astype(jnp.float32)            # [bt, S, H]
    xf = x.reshape(bt * s_len, hidden)            # token-major slab for matmuls

    @pl.when(h == 0)
    def _init():
        acc_ref[...] = jnp.zeros_like(acc_ref)

    # ---- fused per-head QKV projection (Wq/bq pre-scaled by 1/sqrt(dh)) ----
    wqkv = wqkv_ref[0]                            # [H, 3*dh]
    dh = wqkv.shape[1] // 3
    qkv = jnp.dot(xf, wqkv, preferred_element_type=jnp.float32) + bqkv_ref[0]
    q = qkv[:, 0 * dh:1 * dh].reshape(bt, s_len, dh)
    k = qkv[:, 1 * dh:2 * dh].reshape(bt, s_len, dh)
    v = qkv[:, 2 * dh:3 * dh].reshape(bt, s_len, dh)

    # ---- scores + numerically stable softmax over keys (additive mask) ----
    scores = jnp.einsum("bqd,bkd->bqk", q, k, preferred_element_type=jnp.float32)
    mask = mask_ref[...]
    scores = scores + (mask if mask.ndim == 3 else mask[None, :, :])
    scores = scores - jnp.max(scores, axis=-1, keepdims=True)
    probs = jnp.exp(scores)
    denom = jnp.sum(probs, axis=-1, keepdims=True)
    probs = probs * pl.reciprocal(denom, approx=True)   # EUP, not a VALU divide
    # TODO(synk): attn_dropout / hidden_dropout omitted (eval / inference mode)

    ctx = jnp.einsum("bqk,bkd->bqd", probs, v, preferred_element_type=jnp.float32)
    ctx = ctx.reshape(bt * s_len, dh)

    # ---- accumulate this head's slice of the output projection ----
    acc_ref[...] += jnp.dot(ctx, wo_ref[0], preferred_element_type=jnp.float32)

    # ---- epilogue on the last head: residual + LN + FFN + residual + LN ----
    @pl.when(h == n_heads - 1)
    def _finalize():
        attn = _layer_norm(acc_ref[...] + bo_ref[...] + xf,
                           g1_ref[...], be1_ref[...], eps)
        h1 = jnp.dot(attn, w1_ref[...], preferred_element_type=jnp.float32) + b1_ref[...]
        h1 = _gelu(h1)
        h2 = jnp.dot(h1, w2_ref[...], preferred_element_type=jnp.float32) + b2_ref[...]
        y = _layer_norm(h2 + attn, g2_ref[...], be2_ref[...], eps)
        out_ref[...] = y.reshape(bt, s_len, hidden).astype(out_ref.dtype)


def _pack_head_params(p, n_heads):
    """Pre-split / pre-scale weights per head at trace time (free under jit)."""
    hidden = p["wq"].shape[0]
    dh = hidden // n_heads
    scale = 1.0 / math.sqrt(dh)
    wq, bq = p["wq"] * scale, p["bq"] * scale          # fold 1/sqrt(dh) into Q
    sl = lambda a, hh: a[..., hh * dh:(hh + 1) * dh]
    wqkv = jnp.stack(
        [jnp.concatenate([sl(wq, hh), sl(p["wk"], hh), sl(p["wv"], hh)], axis=-1)
         for hh in range(n_heads)], axis=0)            # [nh, H, 3*dh]
    bqkv = jnp.stack(
        [jnp.concatenate([sl(bq, hh), sl(p["bk"], hh), sl(p["bv"], hh)], axis=-1)
         for hh in range(n_heads)], axis=0)            # [nh, 1, 3*dh]
    wo = jnp.stack([p["wo"][hh * dh:(hh + 1) * dh, :] for hh in range(n_heads)],
                   axis=0)                             # [nh, dh, H]
    return wqkv, bqkv, wo


def transformer_layer(x, mask, params, *, n_heads, eps, block_b=None):
    B, S, H = x.shape
    assert H % n_heads == 0
    if block_b is None:
        # Pack as many batch rows per grid step as possible while keeping >= 2
        # "parallel" steps (both v7x TensorCores busy; v5e/v6e have one TC).
        block_b = B // 2 if (B % 2 == 0 and B >= 2) else 1
    assert B % block_b == 0
    n_batch_tiles = B // block_b

    wqkv, bqkv, wo = _pack_head_params(params, n_heads)
    weight_args = [wqkv, bqkv, wo,
                   params["bo"], params["ln1_g"], params["ln1_b"],
                   params["w1"], params["b1"], params["w2"], params["b2"],
                   params["ln2_g"], params["ln2_b"]]

    if mask.ndim == 2:        # shared additive [S, S] mask: one tiny DMA total
        mask_spec = pl.BlockSpec((S, S), lambda b, h: (0, 0))
    else:                     # per-batch additive [B, S, S] mask
        mask_spec = pl.BlockSpec((block_b, S, S), lambda b, h: (b, 0, 0))

    per_head = lambda shape: pl.BlockSpec((1,) + shape[1:], lambda b, h: (h, 0, 0))
    shared = lambda shape: pl.BlockSpec(shape, lambda b, h: (0,) * len(shape))

    in_specs = [
        pl.BlockSpec((block_b, S, H), lambda b, h: (b, 0, 0)),   # hidden_states
        mask_spec,
        per_head(wqkv.shape), per_head(bqkv.shape), per_head(wo.shape),
    ] + [shared(w.shape) for w in weight_args[3:]]

    kernel = functools.partial(transformer_layer_kernel, eps=eps)
    return pl.pallas_call(
        kernel,
        out_shape=jax.ShapeDtypeStruct((B, S, H), x.dtype),
        grid_spec=pltpu.PrefetchScalarGridSpec(
            num_scalar_prefetch=0,
            grid=(n_batch_tiles, n_heads),
            in_specs=in_specs,
            out_specs=pl.BlockSpec((block_b, S, H), lambda b, h: (b, 0, 0)),
            scratch_shapes=[pltpu.VMEM((block_b * S, H), jnp.float32)],
        ),
        compiler_params=pltpu.CompilerParams(
            dimension_semantics=("parallel", "arbitrary")),
    )(x, mask, *weight_args)


def transformer_encoder(x, mask, layer_params, *, n_heads, eps,
                        output_all_encoded_layers=True):
    """Mirrors TransformerEncoder.forward (eval mode)."""
    all_encoder_layers = []
    hidden = x
    for p in layer_params:
        hidden = transformer_layer(hidden, mask, p, n_heads=n_heads, eps=eps)
        if output_all_encoded_layers:
            all_encoder_layers.append(hidden)
    if not output_all_encoded_layers:
        all_encoder_layers.append(hidden)
    return all_encoder_layers


def _reference_encoder(x, mask, layer_params, n_heads, eps):
    """Pure-JAX reference mirroring the PyTorch module (eval mode)."""
    def ln(v, g, b):
        mu = jnp.mean(v, axis=-1, keepdims=True)
        var = jnp.mean((v - mu) ** 2, axis=-1, keepdims=True)
        return (v - mu) * lax.rsqrt(var + eps) * g + b

    def layer(hs, p):
        B, S, H = hs.shape
        dh = H // n_heads
        q = hs @ p["wq"] + p["bq"]
        k = hs @ p["wk"] + p["bk"]
        v = hs @ p["wv"] + p["bv"]
        split = lambda t: t.reshape(B, S, n_heads, dh).transpose(0, 2, 1, 3)
        q, k, v = split(q), split(k), split(v)
        s = jnp.einsum("bhqd,bhkd->bhqk", q, k) / math.sqrt(dh)
        m = mask if mask.ndim == 3 else mask[None]
        s = s + m[:, None]
        pr = jax.nn.softmax(s, axis=-1)
        ctx = jnp.einsum("bhqk,bhkd->bhqd", pr, v).transpose(0, 2, 1, 3).reshape(B, S, H)
        attn = ln(ctx @ p["wo"] + p["bo"] + hs, p["ln1_g"], p["ln1_b"])
        h1 = attn @ p["w1"] + p["b1"]
        h1 = 0.5 * h1 * (1.0 + lax.erf(h1 / math.sqrt(2.0)))
        h2 = h1 @ p["w2"] + p["b2"]
        return ln(h2 + attn, p["ln2_g"], p["ln2_b"])

    outs, hs = [], x
    for p in layer_params:
        hs = layer(hs, p)
        outs.append(hs)
    return outs


if __name__ == "__main__":
    B, S, H, I = 2, 8, 64, 256          # batch, seq, hidden_size, inner_size
    n_layers, n_heads, eps = 2, 2, 1e-12

    key = jax.random.PRNGKey(0)

    def make_layer_params(k):
        ks = jax.random.split(k, 12)
        init = lambda kk, shp: (0.02 * jax.random.normal(kk, shp)).astype(jnp.float32)
        return {
            "wq": init(ks[0], (H, H)), "bq": init(ks[1], (1, H)),
            "wk": init(ks[2], (H, H)), "bk": init(ks[3], (1, H)),
            "wv": init(ks[4], (H, H)), "bv": init(ks[5], (1, H)),
            "wo": init(ks[6], (H, H)), "bo": init(ks[7], (1, H)),
            "ln1_g": jnp.ones((1, H), jnp.float32),
            "ln1_b": jnp.zeros((1, H), jnp.float32),
            "w1": init(ks[8], (H, I)), "b1": init(ks[9], (1, I)),
            "w2": init(ks[10], (I, H)), "b2": init(ks[11], (1, H)),
            "ln2_g": jnp.ones((1, H), jnp.float32),
            "ln2_b": jnp.zeros((1, H), jnp.float32),
        }

    key, *layer_keys = jax.random.split(key, n_layers + 1)
    layer_params = [make_layer_params(k) for k in layer_keys]

    key, xk = jax.random.split(key)
    x = jax.random.normal(xk, (B, S, H), dtype=jnp.float32)

    # Shared additive causal mask [S, S] (0 = attend, -10000 = masked), passed
    # unbatched so the kernel avoids the B*S*S mask DMA entirely.
    causal = jnp.tril(jnp.ones((S, S), jnp.float32))
    mask = (1.0 - causal) * -10000.0

    encoder = jax.jit(functools.partial(transformer_encoder,
                                        n_heads=n_heads, eps=eps))
    outs = jax.block_until_ready(encoder(x, mask, layer_params))

    refs = _reference_encoder(x, mask, layer_params, n_heads, eps)
    assert len(outs) == n_layers
    for o, r in zip(outs, refs):
        assert o.shape == (B, S, H)
        # tolerance slightly relaxed vs. 1e-4: approx-reciprocal softmax (EUP)
        assert jnp.allclose(o, r, atol=2e-3, rtol=2e-3), "mismatch vs JAX reference"
    print("KERNEL_OK")
</pallas_src>

<mosaic_0001>
module attributes {stable_mosaic.version = 11 : i64} {
  func.func @transformer_layer_kernel(%arg0: i32, %arg1: i32, %arg2: memref<1x8x64xf32, #tpu.memory_space<vmem>>, %arg3: memref<8x8xf32, #tpu.memory_space<vmem>>, %arg4: memref<1x64x96xf32, #tpu.memory_space<vmem>>, %arg5: memref<1x1x96xf32, #tpu.memory_space<vmem>>, %arg6: memref<1x32x64xf32, #tpu.memory_space<vmem>>, %arg7: memref<1x64xf32, #tpu.memory_space<vmem>>, %arg8: memref<1x64xf32, #tpu.memory_space<vmem>>, %arg9: memref<1x64xf32, #tpu.memory_space<vmem>>, %arg10: memref<64x256xf32, #tpu.memory_space<vmem>>, %arg11: memref<1x256xf32, #tpu.memory_space<vmem>>, %arg12: memref<256x64xf32, #tpu.memory_space<vmem>>, %arg13: memref<1x64xf32, #tpu.memory_space<vmem>>, %arg14: memref<1x64xf32, #tpu.memory_space<vmem>>, %arg15: memref<1x64xf32, #tpu.memory_space<vmem>>, %arg16: memref<1x8x64xf32, #tpu.memory_space<vmem>>, %arg17: memref<8x64xf32, #tpu.memory_space<vmem>>) attributes {dimension_semantics = [#tpu.dimension_semantics<parallel>, #tpu.dimension_semantics<arbitrary>], iteration_bounds = array<i64: 2, 2>, scalar_prefetch = 0 : i64, scratch_operands = 1 : i64, tpu.core_type = #tpu.core_type<tc>, window_params = [{transform_indices = @transform_0, window_bounds = array<i64: 1, 8, 64>}, {pipeline_mode = #tpu.pipeline_mode<synchronous>, transform_indices = @transform_1, window_bounds = array<i64: 8, 8>}, {transform_indices = @transform_2, window_bounds = array<i64: 1, 64, 96>}, {transform_indices = @transform_3, window_bounds = array<i64: 1, 1, 96>}, {transform_indices = @transform_4, window_bounds = array<i64: 1, 32, 64>}, {pipeline_mode = #tpu.pipeline_mode<synchronous>, transform_indices = @transform_5, window_bounds = array<i64: 1, 64>}, {pipeline_mode = #tpu.pipeline_mode<synchronous>, transform_indices = @transform_6, window_bounds = array<i64: 1, 64>}, {pipeline_mode = #tpu.pipeline_mode<synchronous>, transform_indices = @transform_7, window_bounds = array<i64: 1, 64>}, {pipeline_mode = #tpu.pipeline_mode<synchronous>, transform_indices = @transform_8, window_bounds = array<i64: 64, 256>}, {pipeline_mode = #tpu.pipeline_mode<synchronous>, transform_indices = @transform_9, window_bounds = array<i64: 1, 256>}, {pipeline_mode = #tpu.pipeline_mode<synchronous>, transform_indices = @transform_10, window_bounds = array<i64: 256, 64>}, {pipeline_mode = #tpu.pipeline_mode<synchronous>, transform_indices = @transform_11, window_bounds = array<i64: 1, 64>}, {pipeline_mode = #tpu.pipeline_mode<synchronous>, transform_indices = @transform_12, window_bounds = array<i64: 1, 64>}, {pipeline_mode = #tpu.pipeline_mode<synchronous>, transform_indices = @transform_13, window_bounds = array<i64: 1, 64>}, {transform_indices = @transform_14, window_bounds = array<i64: 1, 8, 64>}]} {
    %c0 = arith.constant 0 : index
    %c0_0 = arith.constant 0 : index
    %c0_1 = arith.constant 0 : index
    %0 = vector.load %arg2[%c0, %c0_0, %c0_1] : memref<1x8x64xf32, #tpu.memory_space<vmem>>, vector<1x8x64xf32>
    %1 = vector.shape_cast %0 : vector<1x8x64xf32> to vector<8x64xf32>
    %c0_i32 = arith.constant 0 : i32
    %2 = arith.cmpi eq, %arg1, %c0_i32 : i32
    %3 = arith.extui %2 : i1 to i32
    %c0_i32_2 = arith.constant 0 : i32
    %4 = arith.cmpi ne, %3, %c0_i32_2 : i32
    scf.if %4 {
      %cst_24 = arith.constant 0.000000e+00 : f32
      %43 = vector.broadcast %cst_24 : f32 to vector<8x64xf32>
      %c0_25 = arith.constant 0 : index
      %c0_26 = arith.constant 0 : index
      %44 = vector.load %arg17[%c0_25, %c0_26] : memref<8x64xf32, #tpu.memory_space<vmem>>, vector<8x64xf32>
      tpu.vector_store %arg17[%c0_25, %c0_26], %43 {strides = array<i32>} : memref<8x64xf32, #tpu.memory_space<vmem>>, vector<8x64xf32>,
    } else {
    }
    %c0_3 = arith.constant 0 : index
    %c0_4 = arith.constant 0 : index
    %c0_5 = arith.constant 0 : index
    %5 = vector.load %arg4[%c0_3, %c0_4, %c0_5] : memref<1x64x96xf32, #tpu.memory_space<vmem>>, vector<1x64x96xf32>
    %6 = vector.shape_cast %5 : vector<1x64x96xf32> to vector<64x96xf32>
    %cst = arith.constant dense<0.000000e+00> : vector<8x96xf32>
    %7 = tpu.matmul %1, %6, %cst {dimension_numbers = #tpu.dot_dimension_numbers<[1], [0], [0], [1], [0, 0, 1, 1], [], []>} : vector<8x64xf32>, vector<64x96xf32>, vector<8x96xf32> -> vector<8x96xf32>
    %c0_6 = arith.constant 0 : index
    %c0_7 = arith.constant 0 : index
    %c0_8 = arith.constant 0 : index
    %8 = vector.load %arg5[%c0_6, %c0_7, %c0_8] : memref<1x1x96xf32, #tpu.memory_space<vmem>>, vector<1x1x96xf32>
    %9 = vector.shape_cast %8 : vector<1x1x96xf32> to vector<1x96xf32>
    %10 = vector.broadcast %9 : vector<1x96xf32> to vector<8x96xf32>
    %11 = arith.addf %7, %10 : vector<8x96xf32>
    %12 = vector.extract_strided_slice %11 {offsets = [0, 0], sizes = [8, 32], strides = [1, 1]} : vector<8x96xf32> to vector<8x32xf32>
    %13 = vector.shape_cast %12 : vector<8x32xf32> to vector<1x8x32xf32>
    %14 = vector.extract_strided_slice %11 {offsets = [0, 32], sizes = [8, 32], strides = [1, 1]} : vector<8x96xf32> to vector<8x32xf32>
    %15 = vector.shape_cast %14 : vector<8x32xf32> to vector<1x8x32xf32>
    %16 = vector.extract_strided_slice %11 {offsets = [0, 64], sizes = [8, 32], strides = [1, 1]} : vector<8x96xf32> to vector<8x32xf32>
    %17 = vector.shape_cast %16 : vector<8x32xf32> to vector<1x8x32xf32>
    "tpu.trace_start"() <{level = 10 : i32, message = "bqd,bkd->bqk"}> : () -> ()
    %cst_9 = arith.constant dense<0.000000e+00> : vector<1x8x8xf32>
    %18 = tpu.matmul %13, %15, %cst_9 {dimension_numbers = #tpu.dot_dimension_numbers<[2], [2], [1], [1], [0, 0, 0, 1, 1, 1], [0], [0]>} : vector<1x8x32xf32>, vector<1x8x32xf32>, vector<1x8x8xf32> -> vector<1x8x8xf32>
    "tpu.trace_stop"() : () -> ()
    %c0_10 = arith.constant 0 : index
    %c0_11 = arith.constant 0 : index
    %19 = vector.load %arg3[%c0_10, %c0_11] : memref<8x8xf32, #tpu.memory_space<vmem>>, vector<8x8xf32>
    %20 = vector.shape_cast %19 : vector<8x8xf32> to vector<1x8x8xf32>
    %21 = arith.addf %18, %20 : vector<1x8x8xf32>
    %cst_12 = arith.constant dense<0xFF800000> : vector<1x8xf32>
    %22 = vector.multi_reduction <maximumf>, %21, %cst_12 [2] : vector<1x8x8xf32> to vector<1x8xf32>
    %23 = vector.shape_cast %22 : vector<1x8xf32> to vector<1x8x1xf32>
    %24 = vector.broadcast %23 : vector<1x8x1xf32> to vector<1x8x8xf32>
    %25 = arith.subf %21, %24 : vector<1x8x8xf32>
    %26 = math.exp %25 : vector<1x8x8xf32>
    %cst_13 = arith.constant dense<0.000000e+00> : vector<1x8xf32>
    %27 = vector.multi_reduction <add>, %26, %cst_13 [2] : vector<1x8x8xf32> to vector<1x8xf32>
    %28 = vector.shape_cast %27 : vector<1x8xf32> to vector<1x8x1xf32>
    %29 = tpu.reciprocal %28 {approx = true} : vector<1x8x1xf32> -> vector<1x8x1xf32>
    %30 = vector.broadcast %29 : vector<1x8x1xf32> to vector<1x8x8xf32>
    %31 = arith.mulf %26, %30 : vector<1x8x8xf32>
    "tpu.trace_start"() <{level = 10 : i32, message = "bqk,bkd->bqd"}> : () -> ()
    %cst_14 = arith.constant dense<0.000000e+00> : vector<1x8x32xf32>
    %32 = tpu.matmul %31, %17, %cst_14 {dimension_numbers = #tpu.dot_dimension_numbers<[2], [1], [1], [2], [0, 0, 0, 1, 1, 2], [0], [0]>} : vector<1x8x8xf32>, vector<1x8x32xf32>, vector<1x8x32xf32> -> vector<1x8x32xf32>
    "tpu.trace_stop"() : () -> ()
    %33 = vector.shape_cast %32 : vector<1x8x32xf32> to vector<8x32xf32>
    %c0_15 = arith.constant 0 : index
    %c0_16 = arith.constant 0 : index
    %34 = vector.load %arg17[%c0_15, %c0_16] : memref<8x64xf32, #tpu.memory_space<vmem>>, vector<8x64xf32>
    %c0_17 = arith.constant 0 : index
    %c0_18 = arith.constant 0 : index
    %c0_19 = arith.constant 0 : index
    %35 = vector.load %arg6[%c0_17, %c0_18, %c0_19] : memref<1x32x64xf32, #tpu.memory_space<vmem>>, vector<1x32x64xf32>
    %36 = vector.shape_cast %35 : vector<1x32x64xf32> to vector<32x64xf32>
    %cst_20 = arith.constant dense<0.000000e+00> : vector<8x64xf32>
    %37 = tpu.matmul %33, %36, %cst_20 {dimension_numbers = #tpu.dot_dimension_numbers<[1], [0], [0], [1], [0, 0, 1, 1], [], []>} : vector<8x32xf32>, vector<32x64xf32>, vector<8x64xf32> -> vector<8x64xf32>
    %38 = arith.addf %34, %37 : vector<8x64xf32>
    %c0_21 = arith.constant 0 : index
    %c0_22 = arith.constant 0 : index
    %39 = vector.load %arg17[%c0_21, %c0_22] : memref<8x64xf32, #tpu.memory_space<vmem>>, vector<8x64xf32>
    tpu.vector_store %arg17[%c0_21, %c0_22], %38 {strides = array<i32>} : memref<8x64xf32, #tpu.memory_space<vmem>>, vector<8x64xf32>,
    %c1_i32 = arith.constant 1 : i32
    %40 = arith.cmpi eq, %arg1, %c1_i32 : i32
    %41 = arith.extui %40 : i1 to i32
    %c0_i32_23 = arith.constant 0 : i32
    %42 = arith.cmpi ne, %41, %c0_i32_23 : i32
    scf.if %42 {
      %c0_24 = arith.constant 0 : index
      %c0_25 = arith.constant 0 : index
      %43 = vector.load %arg17[%c0_24, %c0_25] : memref<8x64xf32, #tpu.memory_space<vmem>>, vector<8x64xf32>
      %c0_26 = arith.constant 0 : index
      %c0_27 = arith.constant 0 : index
      %44 = vector.load %arg7[%c0_26, %c0_27] : memref<1x64xf32, #tpu.memory_space<vmem>>, vector<1x64xf32>
      %45 = vector.broadcast %44 : vector<1x64xf32> to vector<8x64xf32>
      %46 = arith.addf %43, %45 : vector<8x64xf32>
      %47 = arith.addf %46, %1 : vector<8x64xf32>
      %c0_28 = arith.constant 0 : index
      %c0_29 = arith.constant 0 : index
      %48 = vector.load %arg8[%c0_28, %c0_29] : memref<1x64xf32, #tpu.memory_space<vmem>>, vector<1x64xf32>
      %c0_30 = arith.constant 0 : index
      %c0_31 = arith.constant 0 : index
      %49 = vector.load %arg9[%c0_30, %c0_31] : memref<1x64xf32, #tpu.memory_space<vmem>>, vector<1x64xf32>
      %cst_32 = arith.constant dense<0.000000e+00> : vector<8xf32>
      %50 = vector.multi_reduction <add>, %47, %cst_32 [1] : vector<8x64xf32> to vector<8xf32>
      %51 = vector.shape_cast %50 : vector<8xf32> to vector<8x1xf32>
      %52 = arith.mulf %47, %47 : vector<8x64xf32>
      %cst_33 = arith.constant dense<0.000000e+00> : vector<8xf32>
      %53 = vector.multi_reduction <add>, %52, %cst_33 [1] : vector<8x64xf32> to vector<8xf32>
      %54 = vector.shape_cast %53 : vector<8xf32> to vector<8x1xf32>
      %cst_34 = arith.constant 1.562500e-02 : f32
      %55 = vector.broadcast %cst_34 : f32 to vector<8x1xf32>
      %56 = arith.mulf %51, %55 : vector<8x1xf32>
      %cst_35 = arith.constant 1.562500e-02 : f32
      %57 = vector.broadcast %cst_35 : f32 to vector<8x1xf32>
      %58 = arith.mulf %54, %57 : vector<8x1xf32>
      %59 = arith.mulf %56, %56 : vector<8x1xf32>
      %60 = arith.subf %58, %59 : vector<8x1xf32>
      %cst_36 = arith.constant 0.000000e+00 : f32
      %61 = vector.broadcast %cst_36 : f32 to vector<8x1xf32>
      %62 = arith.maximumf %60, %61 : vector<8x1xf32>
      %63 = vector.broadcast %56 : vector<8x1xf32> to vector<8x64xf32>
      %64 = arith.subf %47, %63 : vector<8x64xf32>
      %cst_37 = arith.constant 9.99999996E-13 : f32
      %65 = vector.broadcast %cst_37 : f32 to vector<8x1xf32>
      %66 = arith.addf %62, %65 : vector<8x1xf32>
      %67 = math.rsqrt %66 : vector<8x1xf32>
      %68 = vector.broadcast %67 : vector<8x1xf32> to vector<8x64xf32>
      %69 = arith.mulf %64, %68 : vector<8x64xf32>
      %70 = vector.broadcast %48 : vector<1x64xf32> to vector<8x64xf32>
      %71 = arith.mulf %69, %70 : vector<8x64xf32>
      %72 = vector.broadcast %49 : vector<1x64xf32> to vector<8x64xf32>
      %73 = arith.addf %71, %72 : vector<8x64xf32>
      %c0_38 = arith.constant 0 : index
      %c0_39 = arith.constant 0 : index
      %74 = vector.load %arg10[%c0_38, %c0_39] : memref<64x256xf32, #tpu.memory_space<vmem>>, vector<64x256xf32>
      %cst_40 = arith.constant dense<0.000000e+00> : vector<8x256xf32>
      %75 = tpu.matmul %73, %74, %cst_40 {dimension_numbers = #tpu.dot_dimension_numbers<[1], [0], [0], [1], [0, 0, 1, 1], [], []>} : vector<8x64xf32>, vector<64x256xf32>, vector<8x256xf32> -> vector<8x256xf32>
      %c0_41 = arith.constant 0 : index
      %c0_42 = arith.constant 0 : index
      %76 = vector.load %arg11[%c0_41, %c0_42] : memref<1x256xf32, #tpu.memory_space<vmem>>, vector<1x256xf32>
      %77 = vector.broadcast %76 : vector<1x256xf32> to vector<8x256xf32>
      %78 = arith.addf %75, %77 : vector<8x256xf32>
      %cst_43 = arith.constant 5.000000e-01 : f32
      %79 = vector.broadcast %cst_43 : f32 to vector<8x256xf32>
      %80 = arith.mulf %79, %78 : vector<8x256xf32>
      %cst_44 = arith.constant 0.707106769 : f32
      %81 = vector.broadcast %cst_44 : f32 to vector<8x256xf32>
      %82 = arith.mulf %78, %81 : vector<8x256xf32>
      %83 = math.erf %82 : vector<8x256xf32>
      %cst_45 = arith.constant 1.000000e+00 : f32
      %84 = vector.broadcast %cst_45 : f32 to vector<8x256xf32>
      %85 = arith.addf %84, %83 : vector<8x256xf32>
      %86 = arith.mulf %80, %85 : vector<8x256xf32>
      %c0_46 = arith.constant 0 : index
      %c0_47 = arith.constant 0 : index
      %87 = vector.load %arg12[%c0_46, %c0_47] : memref<256x64xf32, #tpu.memory_space<vmem>>, vector<256x64xf32>
      %cst_48 = arith.constant dense<0.000000e+00> : vector<8x64xf32>
      %88 = tpu.matmul %86, %87, %cst_48 {dimension_numbers = #tpu.dot_dimension_numbers<[1], [0], [0], [1], [0, 0, 1, 1], [], []>} : vector<8x256xf32>, vector<256x64xf32>, vector<8x64xf32> -> vector<8x64xf32>
      %c0_49 = arith.constant 0 : index
      %c0_50 = arith.constant 0 : index
      %89 = vector.load %arg13[%c0_49, %c0_50] : memref<1x64xf32, #tpu.memory_space<vmem>>, vector<1x64xf32>
      %90 = vector.broadcast %89 : vector<1x64xf32> to vector<8x64xf32>
      %91 = arith.addf %88, %90 : vector<8x64xf32>
      %92 = arith.addf %91, %73 : vector<8x64xf32>
      %c0_51 = arith.constant 0 : index
      %c0_52 = arith.constant 0 : index
      %93 = vector.load %arg14[%c0_51, %c0_52] : memref<1x64xf32, #tpu.memory_space<vmem>>, vector<1x64xf32>
      %c0_53 = arith.constant 0 : index
      %c0_54 = arith.constant 0 : index
      %94 = vector.load %arg15[%c0_53, %c0_54] : memref<1x64xf32, #tpu.memory_space<vmem>>, vector<1x64xf32>
      %cst_55 = arith.constant dense<0.000000e+00> : vector<8xf32>
      %95 = vector.multi_reduction <add>, %92, %cst_55 [1] : vector<8x64xf32> to vector<8xf32>
      %96 = vector.shape_cast %95 : vector<8xf32> to vector<8x1xf32>
      %97 = arith.mulf %92, %92 : vector<8x64xf32>
      %cst_56 = arith.constant dense<0.000000e+00> : vector<8xf32>
      %98 = vector.multi_reduction <add>, %97, %cst_56 [1] : vector<8x64xf32> to vector<8xf32>
      %99 = vector.shape_cast %98 : vector<8xf32> to vector<8x1xf32>
      %cst_57 = arith.constant 1.562500e-02 : f32
      %100 = vector.broadcast %cst_57 : f32 to vector<8x1xf32>
      %101 = arith.mulf %96, %100 : vector<8x1xf32>
      %cst_58 = arith.constant 1.562500e-02 : f32
      %102 = vector.broadcast %cst_58 : f32 to vector<8x1xf32>
      %103 = arith.mulf %99, %102 : vector<8x1xf32>
      %104 = arith.mulf %101, %101 : vector<8x1xf32>
      %105 = arith.subf %103, %104 : vector<8x1xf32>
      %cst_59 = arith.constant 0.000000e+00 : f32
      %106 = vector.broadcast %cst_59 : f32 to vector<8x1xf32>
      %107 = arith.maximumf %105, %106 : vector<8x1xf32>
      %108 = vector.broadcast %101 : vector<8x1xf32> to vector<8x64xf32>
      %109 = arith.subf %92, %108 : vector<8x64xf32>
      %cst_60 = arith.constant 9.99999996E-13 : f32
      %110 = vector.broadcast %cst_60 : f32 to vector<8x1xf32>
      %111 = arith.addf %107, %110 : vector<8x1xf32>
      %112 = math.rsqrt %111 : vector<8x1xf32>
      %113 = vector.broadcast %112 : vector<8x1xf32> to vector<8x64xf32>
      %114 = arith.mulf %109, %113 : vector<8x64xf32>
      %115 = vector.broadcast %93 : vector<1x64xf32> to vector<8x64xf32>
      %116 = arith.mulf %114, %115 : vector<8x64xf32>
      %117 = vector.broadcast %94 : vector<1x64xf32> to vector<8x64xf32>
      %118 = arith.addf %116, %117 : vector<8x64xf32>
      %119 = vector.shape_cast %118 : vector<8x64xf32> to vector<1x8x64xf32>
      %c0_61 = arith.constant 0 : index
      %c0_62 = arith.constant 0 : index
      %c0_63 = arith.constant 0 : index
      %120 = vector.load %arg16[%c0_61, %c0_62, %c0_63] : memref<1x8x64xf32, #tpu.memory_space<vmem>>, vector<1x8x64xf32>
      tpu.vector_store %arg16[%c0_61, %c0_62, %c0_63], %119 {strides = array<i32>} : memref<1x8x64xf32, #tpu.memory_space<vmem>>, vector<1x8x64xf32>,
    } else {
    }
    return
  }
  func.func @transform_0(%arg0: i32, %arg1: i32) -> (i32, i32, i32) {
    %c0_i32 = arith.constant 0 : i32
    %c0_i32_0 = arith.constant 0 : i32
    %c0_i32_1 = arith.constant 0 : i32
    return %arg0, %c0_i32, %c0_i32_0 : i32, i32, i32
  }
  func.func @transform_1(%arg0: i32, %arg1: i32) -> (i32, i32) {
    %c0_i32 = arith.constant 0 : i32
    %c0_i32_0 = arith.constant 0 : i32
    %c0_i32_1 = arith.constant 0 : i32
    return %c0_i32, %c0_i32_0 : i32, i32
  }
  func.func @transform_2(%arg0: i32, %arg1: i32) -> (i32, i32, i32) {
    %c0_i32 = arith.constant 0 : i32
    %c0_i32_0 = arith.constant 0 : i32
    %c0_i32_1 = arith.constant 0 : i32
    return %arg1, %c0_i32, %c0_i32_0 : i32, i32, i32
  }
  func.func @transform_3(%arg0: i32, %arg1: i32) -> (i32, i32, i32) {
    %c0_i32 = arith.constant 0 : i32
    %c0_i32_0 = arith.constant 0 : i32
    %c0_i32_1 = arith.constant 0 : i32
    return %arg1, %c0_i32, %c0_i32_0 : i32, i32, i32
  }
  func.func @transform_4(%arg0: i32, %arg1: i32) -> (i32, i32, i32) {
    %c0_i32 = arith.constant 0 : i32
    %c0_i32_0 = arith.constant 0 : i32
    %c0_i32_1 = arith.constant 0 : i32
    return %arg1, %c0_i32, %c0_i32_0 : i32, i32, i32
  }
  func.func @transform_5(%arg0: i32, %arg1: i32) -> (i32, i32) {
    %c0_i32 = arith.constant 0 : i32
    %c0_i32_0 = arith.constant 0 : i32
    %c0_i32_1 = arith.constant 0 : i32
    return %c0_i32, %c0_i32_0 : i32, i32
  }
  func.func @transform_6(%arg0: i32, %arg1: i32) -> (i32, i32) {
    %c0_i32 = arith.constant 0 : i32
    %c0_i32_0 = arith.constant 0 : i32
    %c0_i32_1 = arith.constant 0 : i32
    return %c0_i32, %c0_i32_0 : i32, i32
  }
  func.func @transform_7(%arg0: i32, %arg1: i32) -> (i32, i32) {
    %c0_i32 = arith.constant 0 : i32
    %c0_i32_0 = arith.constant 0 : i32
    %c0_i32_1 = arith.constant 0 : i32
    return %c0_i32, %c0_i32_0 : i32, i32
  }
  func.func @transform_8(%arg0: i32, %arg1: i32) -> (i32, i32) {
    %c0_i32 = arith.constant 0 : i32
    %c0_i32_0 = arith.constant 0 : i32
    %c0_i32_1 = arith.constant 0 : i32
    return %c0_i32, %c0_i32_0 : i32, i32
  }
  func.func @transform_9(%arg0: i32, %arg1: i32) -> (i32, i32) {
    %c0_i32 = arith.constant 0 : i32
    %c0_i32_0 = arith.constant 0 : i32
    %c0_i32_1 = arith.constant 0 : i32
    return %c0_i32, %c0_i32_0 : i32, i32
  }
  func.func @transform_10(%arg0: i32, %arg1: i32) -> (i32, i32) {
    %c0_i32 = arith.constant 0 : i32
    %c0_i32_0 = arith.constant 0 : i32
    %c0_i32_1 = arith.constant 0 : i32
    return %c0_i32, %c0_i32_0 : i32, i32
  }
  func.func @transform_11(%arg0: i32, %arg1: i32) -> (i32, i32) {
    %c0_i32 = arith.constant 0 : i32
    %c0_i32_0 = arith.constant 0 : i32
    %c0_i32_1 = arith.constant 0 : i32
    return %c0_i32, %c0_i32_0 : i32, i32
  }
  func.func @transform_12(%arg0: i32, %arg1: i32) -> (i32, i32) {
    %c0_i32 = arith.constant 0 : i32
    %c0_i32_0 = arith.constant 0 : i32
    %c0_i32_1 = arith.constant 0 : i32
    return %c0_i32, %c0_i32_0 : i32, i32
  }
  func.func @transform_13(%arg0: i32, %arg1: i32) -> (i32, i32) {
    %c0_i32 = arith.constant 0 : i32
    %c0_i32_0 = arith.constant 0 : i32
    %c0_i32_1 = arith.constant 0 : i32
    return %c0_i32, %c0_i32_0 : i32, i32
  }
  func.func @transform_14(%arg0: i32, %arg1: i32) -> (i32, i32, i32) {
    %c0_i32 = arith.constant 0 : i32
    %c0_i32_0 = arith.constant 0 : i32
    %c0_i32_1 = arith.constant 0 : i32
    return %arg0, %c0_i32, %c0_i32_0 : i32, i32, i32
  }
}

module attributes {stable_mosaic.version = 11 : i64} {
  func.func @transformer_layer_kernel(%arg0: i32, %arg1: i32, %arg2: memref<1x8x64xf32, #tpu.memory_space<vmem>>, %arg3: memref<8x8xf32, #tpu.memory_space<vmem>>, %arg4: memref<1x64x96xf32, #tpu.memory_space<vmem>>, %arg5: memref<1x1x96xf32, #tpu.memory_space<vmem>>, %arg6: memref<1x32x64xf32, #tpu.memory_space<vmem>>, %arg7: memref<1x64xf32, #tpu.memory_space<vmem>>, %arg8: memref<1x64xf32, #tpu.memory_space<vmem>>, %arg9: memref<1x64xf32, #tpu.memory_space<vmem>>, %arg10: memref<64x256xf32, #tpu.memory_space<vmem>>, %arg11: memref<1x256xf32, #tpu.memory_space<vmem>>, %arg12: memref<256x64xf32, #tpu.memory_space<vmem>>, %arg13: memref<1x64xf32, #tpu.memory_space<vmem>>, %arg14: memref<1x64xf32, #tpu.memory_space<vmem>>, %arg15: memref<1x64xf32, #tpu.memory_space<vmem>>, %arg16: memref<1x8x64xf32, #tpu.memory_space<vmem>>, %arg17: memref<8x64xf32, #tpu.memory_space<vmem>>) attributes {dimension_semantics = [#tpu.dimension_semantics<parallel>, #tpu.dimension_semantics<arbitrary>], iteration_bounds = array<i64: 2, 2>, scalar_prefetch = 0 : i64, scratch_operands = 1 : i64, tpu.core_type = #tpu.core_type<tc>, window_params = [{transform_indices = @transform_0, window_bounds = array<i64: 1, 8, 64>}, {pipeline_mode = #tpu.pipeline_mode<synchronous>, transform_indices = @transform_1, window_bounds = array<i64: 8, 8>}, {transform_indices = @transform_2, window_bounds = array<i64: 1, 64, 96>}, {transform_indices = @transform_3, window_bounds = array<i64: 1, 1, 96>}, {transform_indices = @transform_4, window_bounds = array<i64: 1, 32, 64>}, {pipeline_mode = #tpu.pipeline_mode<synchronous>, transform_indices = @transform_5, window_bounds = array<i64: 1, 64>}, {pipeline_mode = #tpu.pipeline_mode<synchronous>, transform_indices = @transform_6, window_bounds = array<i64: 1, 64>}, {pipeline_mode = #tpu.pipeline_mode<synchronous>, transform_indices = @transform_7, window_bounds = array<i64: 1, 64>}, {pipeline_mode = #tpu.pipeline_mode<synchronous>, transform_indices = @transform_8, window_bounds = array<i64: 64, 256>}, {pipeline_mode = #tpu.pipeline_mode<synchronous>, transform_indices = @transform_9, window_bounds = array<i64: 1, 256>}, {pipeline_mode = #tpu.pipeline_mode<synchronous>, transform_indices = @transform_10, window_bounds = array<i64: 256, 64>}, {pipeline_mode = #tpu.pipeline_mode<synchronous>, transform_indices = @transform_11, window_bounds = array<i64: 1, 64>}, {pipeline_mode = #tpu.pipeline_mode<synchronous>, transform_indices = @transform_12, window_bounds = array<i64: 1, 64>}, {pipeline_mode = #tpu.pipeline_mode<synchronous>, transform_indices = @transform_13, window_bounds = array<i64: 1, 64>}, {transform_indices = @transform_14, window_bounds = array<i64: 1, 8, 64>}]} {
    %c0 = arith.constant 0 : index
    %c0_0 = arith.constant 0 : index
    %c0_1 = arith.constant 0 : index
    %0 = vector.load %arg2[%c0, %c0_0, %c0_1] : memref<1x8x64xf32, #tpu.memory_space<vmem>>, vector<1x8x64xf32>
    %1 = vector.shape_cast %0 : vector<1x8x64xf32> to vector<8x64xf32>
    %c0_i32 = arith.constant 0 : i32
    %2 = arith.cmpi eq, %arg1, %c0_i32 : i32
    %3 = arith.extui %2 : i1 to i32
    %c0_i32_2 = arith.constant 0 : i32
    %4 = arith.cmpi ne, %3, %c0_i32_2 : i32
    scf.if %4 {
      %cst_24 = arith.constant 0.000000e+00 : f32
      %43 = vector.broadcast %cst_24 : f32 to vector<8x64xf32>
      %c0_25 = arith.constant 0 : index
      %c0_26 = arith.constant 0 : index
      %44 = vector.load %arg17[%c0_25, %c0_26] : memref<8x64xf32, #tpu.memory_space<vmem>>, vector<8x64xf32>
      tpu.vector_store %arg17[%c0_25, %c0_26], %43 {strides = array<i32>} : memref<8x64xf32, #tpu.memory_space<vmem>>, vector<8x64xf32>,
    } else {
    }
    %c0_3 = arith.constant 0 : index
    %c0_4 = arith.constant 0 : index
    %c0_5 = arith.constant 0 : index
    %5 = vector.load %arg4[%c0_3, %c0_4, %c0_5] : memref<1x64x96xf32, #tpu.memory_space<vmem>>, vector<1x64x96xf32>
    %6 = vector.shape_cast %5 : vector<1x64x96xf32> to vector<64x96xf32>
    %cst = arith.constant dense<0.000000e+00> : vector<8x96xf32>
    %7 = tpu.matmul %1, %6, %cst {dimension_numbers = #tpu.dot_dimension_numbers<[1], [0], [0], [1], [0, 0, 1, 1], [], []>} : vector<8x64xf32>, vector<64x96xf32>, vector<8x96xf32> -> vector<8x96xf32>
    %c0_6 = arith.constant 0 : index
    %c0_7 = arith.constant 0 : index
    %c0_8 = arith.constant 0 : index
    %8 = vector.load %arg5[%c0_6, %c0_7, %c0_8] : memref<1x1x96xf32, #tpu.memory_space<vmem>>, vector<1x1x96xf32>
    %9 = vector.shape_cast %8 : vector<1x1x96xf32> to vector<1x96xf32>
    %10 = vector.broadcast %9 : vector<1x96xf32> to vector<8x96xf32>
    %11 = arith.addf %7, %10 : vector<8x96xf32>
    %12 = vector.extract_strided_slice %11 {offsets = [0, 0], sizes = [8, 32], strides = [1, 1]} : vector<8x96xf32> to vector<8x32xf32>
    %13 = vector.shape_cast %12 : vector<8x32xf32> to vector<1x8x32xf32>
    %14 = vector.extract_strided_slice %11 {offsets = [0, 32], sizes = [8, 32], strides = [1, 1]} : vector<8x96xf32> to vector<8x32xf32>
    %15 = vector.shape_cast %14 : vector<8x32xf32> to vector<1x8x32xf32>
    %16 = vector.extract_strided_slice %11 {offsets = [0, 64], sizes = [8, 32], strides = [1, 1]} : vector<8x96xf32> to vector<8x32xf32>
    %17 = vector.shape_cast %16 : vector<8x32xf32> to vector<1x8x32xf32>
    "tpu.trace_start"() <{level = 10 : i32, message = "bqd,bkd->bqk"}> : () -> ()
    %cst_9 = arith.constant dense<0.000000e+00> : vector<1x8x8xf32>
    %18 = tpu.matmul %13, %15, %cst_9 {dimension_numbers = #tpu.dot_dimension_numbers<[2], [2], [1], [1], [0, 0, 0, 1, 1, 1], [0], [0]>} : vector<1x8x32xf32>, vector<1x8x32xf32>, vector<1x8x8xf32> -> vector<1x8x8xf32>
    "tpu.trace_stop"() : () -> ()
    %c0_10 = arith.constant 0 : index
    %c0_11 = arith.constant 0 : index
    %19 = vector.load %arg3[%c0_10, %c0_11] : memref<8x8xf32, #tpu.memory_space<vmem>>, vector<8x8xf32>
    %20 = vector.shape_cast %19 : vector<8x8xf32> to vector<1x8x8xf32>
    %21 = arith.addf %18, %20 : vector<1x8x8xf32>
    %cst_12 = arith.constant dense<0xFF800000> : vector<1x8xf32>
    %22 = vector.multi_reduction <maximumf>, %21, %cst_12 [2] : vector<1x8x8xf32> to vector<1x8xf32>
    %23 = vector.shape_cast %22 : vector<1x8xf32> to vector<1x8x1xf32>
    %24 = vector.broadcast %23 : vector<1x8x1xf32> to vector<1x8x8xf32>
    %25 = arith.subf %21, %24 : vector<1x8x8xf32>
    %26 = math.exp %25 : vector<1x8x8xf32>
    %cst_13 = arith.constant dense<0.000000e+00> : vector<1x8xf32>
    %27 = vector.multi_reduction <add>, %26, %cst_13 [2] : vector<1x8x8xf32> to vector<1x8xf32>
    %28 = vector.shape_cast %27 : vector<1x8xf32> to vector<1x8x1xf32>
    %29 = tpu.reciprocal %28 {approx = true} : vector<1x8x1xf32> -> vector<1x8x1xf32>
    %30 = vector.broadcast %29 : vector<1x8x1xf32> to vector<1x8x8xf32>
    %31 = arith.mulf %26, %30 : vector<1x8x8xf32>
    "tpu.trace_start"() <{level = 10 : i32, message = "bqk,bkd->bqd"}> : () -> ()
    %cst_14 = arith.constant dense<0.000000e+00> : vector<1x8x32xf32>
    %32 = tpu.matmul %31, %17, %cst_14 {dimension_numbers = #tpu.dot_dimension_numbers<[2], [1], [1], [2], [0, 0, 0, 1, 1, 2], [0], [0]>} : vector<1x8x8xf32>, vector<1x8x32xf32>, vector<1x8x32xf32> -> vector<1x8x32xf32>
    "tpu.trace_stop"() : () -> ()
    %33 = vector.shape_cast %32 : vector<1x8x32xf32> to vector<8x32xf32>
    %c0_15 = arith.constant 0 : index
    %c0_16 = arith.constant 0 : index
    %34 = vector.load %arg17[%c0_15, %c0_16] : memref<8x64xf32, #tpu.memory_space<vmem>>, vector<8x64xf32>
    %c0_17 = arith.constant 0 : index
    %c0_18 = arith.constant 0 : index
    %c0_19 = arith.constant 0 : index
    %35 = vector.load %arg6[%c0_17, %c0_18, %c0_19] : memref<1x32x64xf32, #tpu.memory_space<vmem>>, vector<1x32x64xf32>
    %36 = vector.shape_cast %35 : vector<1x32x64xf32> to vector<32x64xf32>
    %cst_20 = arith.constant dense<0.000000e+00> : vector<8x64xf32>
    %37 = tpu.matmul %33, %36, %cst_20 {dimension_numbers = #tpu.dot_dimension_numbers<[1], [0], [0], [1], [0, 0, 1, 1], [], []>} : vector<8x32xf32>, vector<32x64xf32>, vector<8x64xf32> -> vector<8x64xf32>
    %38 = arith.addf %34, %37 : vector<8x64xf32>
    %c0_21 = arith.constant 0 : index
    %c0_22 = arith.constant 0 : index
    %39 = vector.load %arg17[%c0_21, %c0_22] : memref<8x64xf32, #tpu.memory_space<vmem>>, vector<8x64xf32>
    tpu.vector_store %arg17[%c0_21, %c0_22], %38 {strides = array<i32>} : memref<8x64xf32, #tpu.memory_space<vmem>>, vector<8x64xf32>,
    %c1_i32 = arith.constant 1 : i32
    %40 = arith.cmpi eq, %arg1, %c1_i32 : i32
    %41 = arith.extui %40 : i1 to i32
    %c0_i32_23 = arith.constant 0 : i32
    %42 = arith.cmpi ne, %41, %c0_i32_23 : i32
    scf.if %42 {
      %c0_24 = arith.constant 0 : index
      %c0_25 = arith.constant 0 : index
      %43 = vector.load %arg17[%c0_24, %c0_25] : memref<8x64xf32, #tpu.memory_space<vmem>>, vector<8x64xf32>
      %c0_26 = arith.constant 0 : index
      %c0_27 = arith.constant 0 : index
      %44 = vector.load %arg7[%c0_26, %c0_27] : memref<1x64xf32, #tpu.memory_space<vmem>>, vector<1x64xf32>
      %45 = vector.broadcast %44 : vector<1x64xf32> to vector<8x64xf32>
      %46 = arith.addf %43, %45 : vector<8x64xf32>
      %47 = arith.addf %46, %1 : vector<8x64xf32>
      %c0_28 = arith.constant 0 : index
      %c0_29 = arith.constant 0 : index
      %48 = vector.load %arg8[%c0_28, %c0_29] : memref<1x64xf32, #tpu.memory_space<vmem>>, vector<1x64xf32>
      %c0_30 = arith.constant 0 : index
      %c0_31 = arith.constant 0 : index
      %49 = vector.load %arg9[%c0_30, %c0_31] : memref<1x64xf32, #tpu.memory_space<vmem>>, vector<1x64xf32>
      %cst_32 = arith.constant dense<0.000000e+00> : vector<8xf32>
      %50 = vector.multi_reduction <add>, %47, %cst_32 [1] : vector<8x64xf32> to vector<8xf32>
      %51 = vector.shape_cast %50 : vector<8xf32> to vector<8x1xf32>
      %52 = arith.mulf %47, %47 : vector<8x64xf32>
      %cst_33 = arith.constant dense<0.000000e+00> : vector<8xf32>
      %53 = vector.multi_reduction <add>, %52, %cst_33 [1] : vector<8x64xf32> to vector<8xf32>
      %54 = vector.shape_cast %53 : vector<8xf32> to vector<8x1xf32>
      %cst_34 = arith.constant 1.562500e-02 : f32
      %55 = vector.broadcast %cst_34 : f32 to vector<8x1xf32>
      %56 = arith.mulf %51, %55 : vector<8x1xf32>
      %cst_35 = arith.constant 1.562500e-02 : f32
      %57 = vector.broadcast %cst_35 : f32 to vector<8x1xf32>
      %58 = arith.mulf %54, %57 : vector<8x1xf32>
      %59 = arith.mulf %56, %56 : vector<8x1xf32>
      %60 = arith.subf %58, %59 : vector<8x1xf32>
      %cst_36 = arith.constant 0.000000e+00 : f32
      %61 = vector.broadcast %cst_36 : f32 to vector<8x1xf32>
      %62 = arith.maximumf %60, %61 : vector<8x1xf32>
      %63 = vector.broadcast %56 : vector<8x1xf32> to vector<8x64xf32>
      %64 = arith.subf %47, %63 : vector<8x64xf32>
      %cst_37 = arith.constant 9.99999996E-13 : f32
      %65 = vector.broadcast %cst_37 : f32 to vector<8x1xf32>
      %66 = arith.addf %62, %65 : vector<8x1xf32>
      %67 = math.rsqrt %66 : vector<8x1xf32>
      %68 = vector.broadcast %67 : vector<8x1xf32> to vector<8x64xf32>
      %69 = arith.mulf %64, %68 : vector<8x64xf32>
      %70 = vector.broadcast %48 : vector<1x64xf32> to vector<8x64xf32>
      %71 = arith.mulf %69, %70 : vector<8x64xf32>
      %72 = vector.broadcast %49 : vector<1x64xf32> to vector<8x64xf32>
      %73 = arith.addf %71, %72 : vector<8x64xf32>
      %c0_38 = arith.constant 0 : index
      %c0_39 = arith.constant 0 : index
      %74 = vector.load %arg10[%c0_38, %c0_39] : memref<64x256xf32, #tpu.memory_space<vmem>>, vector<64x256xf32>
      %cst_40 = arith.constant dense<0.000000e+00> : vector<8x256xf32>
      %75 = tpu.matmul %73, %74, %cst_40 {dimension_numbers = #tpu.dot_dimension_numbers<[1], [0], [0], [1], [0, 0, 1, 1], [], []>} : vector<8x64xf32>, vector<64x256xf32>, vector<8x256xf32> -> vector<8x256xf32>
      %c0_41 = arith.constant 0 : index
      %c0_42 = arith.constant 0 : index
      %76 = vector.load %arg11[%c0_41, %c0_42] : memref<1x256xf32, #tpu.memory_space<vmem>>, vector<1x256xf32>
      %77 = vector.broadcast %76 : vector<1x256xf32> to vector<8x256xf32>
      %78 = arith.addf %75, %77 : vector<8x256xf32>
      %cst_43 = arith.constant 5.000000e-01 : f32
      %79 = vector.broadcast %cst_43 : f32 to vector<8x256xf32>
      %80 = arith.mulf %79, %78 : vector<8x256xf32>
      %cst_44 = arith.constant 0.707106769 : f32
      %81 = vector.broadcast %cst_44 : f32 to vector<8x256xf32>
      %82 = arith.mulf %78, %81 : vector<8x256xf32>
      %83 = math.erf %82 : vector<8x256xf32>
      %cst_45 = arith.constant 1.000000e+00 : f32
      %84 = vector.broadcast %cst_45 : f32 to vector<8x256xf32>
      %85 = arith.addf %84, %83 : vector<8x256xf32>
      %86 = arith.mulf %80, %85 : vector<8x256xf32>
      %c0_46 = arith.constant 0 : index
      %c0_47 = arith.constant 0 : index
      %87 = vector.load %arg12[%c0_46, %c0_47] : memref<256x64xf32, #tpu.memory_space<vmem>>, vector<256x64xf32>
      %cst_48 = arith.constant dense<0.000000e+00> : vector<8x64xf32>
      %88 = tpu.matmul %86, %87, %cst_48 {dimension_numbers = #tpu.dot_dimension_numbers<[1], [0], [0], [1], [0, 0, 1, 1], [], []>} : vector<8x256xf32>, vector<256x64xf32>, vector<8x64xf32> -> vector<8x64xf32>
      %c0_49 = arith.constant 0 : index
      %c0_50 = arith.constant 0 : index
      %89 = vector.load %arg13[%c0_49, %c0_50] : memref<1x64xf32, #tpu.memory_space<vmem>>, vector<1x64xf32>
      %90 = vector.broadcast %89 : vector<1x64xf32> to vector<8x64xf32>
      %91 = arith.addf %88, %90 : vector<8x64xf32>
      %92 = arith.addf %91, %73 : vector<8x64xf32>
      %c0_51 = arith.constant 0 : index
      %c0_52 = arith.constant 0 : index
      %93 = vector.load %arg14[%c0_51, %c0_52] : memref<1x64xf32, #tpu.memory_space<vmem>>, vector<1x64xf32>
      %c0_53 = arith.constant 0 : index
      %c0_54 = arith.constant 0 : index
      %94 = vector.load %arg15[%c0_53, %c0_54] : memref<1x64xf32, #tpu.memory_space<vmem>>, vector<1x64xf32>
      %cst_55 = arith.constant dense<0.000000e+00> : vector<8xf32>
      %95 = vector.multi_reduction <add>, %92, %cst_55 [1] : vector<8x64xf32> to vector<8xf32>
      %96 = vector.shape_cast %95 : vector<8xf32> to vector<8x1xf32>
      %97 = arith.mulf %92, %92 : vector<8x64xf32>
      %cst_56 = arith.constant dense<0.000000e+00> : vector<8xf32>
      %98 = vector.multi_reduction <add>, %97, %cst_56 [1] : vector<8x64xf32> to vector<8xf32>
      %99 = vector.shape_cast %98 : vector<8xf32> to vector<8x1xf32>
      %cst_57 = arith.constant 1.562500e-02 : f32
      %100 = vector.broadcast %cst_57 : f32 to vector<8x1xf32>
      %101 = arith.mulf %96, %100 : vector<8x1xf32>
      %cst_58 = arith.constant 1.562500e-02 : f32
      %102 = vector.broadcast %cst_58 : f32 to vector<8x1xf32>
      %103 = arith.mulf %99, %102 : vector<8x1xf32>
      %104 = arith.mulf %101, %101 : vector<8x1xf32>
      %105 = arith.subf %103, %104 : vector<8x1xf32>
      %cst_59 = arith.constant 0.000000e+00 : f32
      %106 = vector.broadcast %cst_59 : f32 to vector<8x1xf32>
      %107 = arith.maximumf %105, %106 : vector<8x1xf32>
      %108 = vector.broadcast %101 : vector<8x1xf32> to vector<8x64xf32>
      %109 = arith.subf %92, %108 : vector<8x64xf32>
      %cst_60 = arith.constant 9.99999996E-13 : f32
      %110 = vector.broadcast %cst_60 : f32 to vector<8x1xf32>
      %111 = arith.addf %107, %110 : vector<8x1xf32>
      %112 = math.rsqrt %111 : vector<8x1xf32>
      %113 = vector.broadcast %112 : vector<8x1xf32> to vector<8x64xf32>
      %114 = arith.mulf %109, %113 : vector<8x64xf32>
      %115 = vector.broadcast %93 : vector<1x64xf32> to vector<8x64xf32>
      %116 = arith.mulf %114, %115 : vector<8x64xf32>
      %117 = vector.broadcast %94 : vector<1x64xf32> to vector<8x64xf32>
      %118 = arith.addf %116, %117 : vector<8x64xf32>
      %119 = vector.shape_cast %118 : vector<8x64xf32> to vector<1x8x64xf32>
      %c0_61 = arith.constant 0 : index
      %c0_62 = arith.constant 0 : index
      %c0_63 = arith.constant 0 : index
      %120 = vector.load %arg16[%c0_61, %c0_62, %c0_63] : memref<1x8x64xf32, #tpu.memory_space<vmem>>, vector<1x8x64xf32>
      tpu.vector_store %arg16[%c0_61, %c0_62, %c0_63], %119 {strides = array<i32>} : memref<1x8x64xf32, #tpu.memory_space<vmem>>, vector<1x8x64xf32>,
    } else {
    }
    return
  }
  func.func @transform_0(%arg0: i32, %arg1: i32) -> (i32, i32, i32) {
    %c0_i32 = arith.constant 0 : i32
    %c0_i32_0 = arith.constant 0 : i32
    %c0_i32_1 = arith.constant 0 : i32
    return %arg0, %c0_i32, %c0_i32_0 : i32, i32, i32
  }
  func.func @transform_1(%arg0: i32, %arg1: i32) -> (i32, i32) {
    %c0_i32 = arith.constant 0 : i32
    %c0_i32_0 = arith.constant 0 : i32
    %c0_i32_1 = arith.constant 0 : i32
    return %c0_i32, %c0_i32_0 : i32, i32
  }
  func.func @transform_2(%arg0: i32, %arg1: i32) -> (i32, i32, i32) {
    %c0_i32 = arith.constant 0 : i32
    %c0_i32_0 = arith.constant 0 : i32
    %c0_i32_1 = arith.constant 0 : i32
    return %arg1, %c0_i32, %c0_i32_0 : i32, i32, i32
  }
  func.func @transform_3(%arg0: i32, %arg1: i32) -> (i32, i32, i32) {
    %c0_i32 = arith.constant 0 : i32
    %c0_i32_0 = arith.constant 0 : i32
    %c0_i32_1 = arith.constant 0 : i32
    return %arg1, %c0_i32, %c0_i32_0 : i32, i32, i32
  }
  func.func @transform_4(%arg0: i32, %arg1: i32) -> (i32, i32, i32) {
    %c0_i32 = arith.constant 0 : i32
    %c0_i32_0 = arith.constant 0 : i32
    %c0_i32_1 = arith.constant 0 : i32
    return %arg1, %c0_i32, %c0_i32_0 : i32, i32, i32
  }
  func.func @transform_5(%arg0: i32, %arg1: i32) -> (i32, i32) {
    %c0_i32 = arith.constant 0 : i32
    %c0_i32_0 = arith.constant 0 : i32
    %c0_i32_1 = arith.constant 0 : i32
    return %c0_i32, %c0_i32_0 : i32, i32
  }
  func.func @transform_6(%arg0: i32, %arg1: i32) -> (i32, i32) {
    %c0_i32 = arith.constant 0 : i32
    %c0_i32_0 = arith.constant 0 : i32
    %c0_i32_1 = arith.constant 0 : i32
    return %c0_i32, %c0_i32_0 : i32, i32
  }
  func.func @transform_7(%arg0: i32, %arg1: i32) -> (i32, i32) {
    %c0_i32 = arith.constant 0 : i32
    %c0_i32_0 = arith.constant 0 : i32
    %c0_i32_1 = arith.constant 0 : i32
    return %c0_i32, %c0_i32_0 : i32, i32
  }
  func.func @transform_8(%arg0: i32, %arg1: i32) -> (i32, i32) {
    %c0_i32 = arith.constant 0 : i32
    %c0_i32_0 = arith.constant 0 : i32
    %c0_i32_1 = arith.constant 0 : i32
    return %c0_i32, %c0_i32_0 : i32, i32
  }
  func.func @transform_9(%arg0: i32, %arg1: i32) -> (i32, i32) {
    %c0_i32 = arith.constant 0 : i32
    %c0_i32_0 = arith.constant 0 : i32
    %c0_i32_1 = arith.constant 0 : i32
    return %c0_i32, %c0_i32_0 : i32, i32
  }
  func.func @transform_10(%arg0: i32, %arg1: i32) -> (i32, i32) {
    %c0_i32 = arith.constant 0 : i32
    %c0_i32_0 = arith.constant 0 : i32
    %c0_i32_1 = arith.constant 0 : i32
    return %c0_i32, %c0_i32_0 : i32, i32
  }
  func.func @transform_11(%arg0: i32, %arg1: i32) -> (i32, i32) {
    %c0_i32 = arith.constant 0 : i32
    %c0_i32_0 = arith.constant 0 : i32
    %c0_i32_1 = arith.constant 0 : i32
    return %c0_i32, %c0_i32_0 : i32, i32
  }
  func.func @transform_12(%arg0: i32, %arg1: i32) -> (i32, i32) {
    %c0_i32 = arith.constant 0 : i32
    %c0_i32_0 = arith.constant 0 : i32
    %c0_i32_1 = arith.constant 0 : i32
    return %c0_i32, %c0_i32_0 : i32, i32
  }
  func.func @transform_13(%arg0: i32, %arg1: i32) -> (i32, i32) {
    %c0_i32 = arith.constant 0 : i32
    %c0_i32_0 = arith.constant 0 : i32
    %c0_i32_1 = arith.constant 0 : i32
    return %c0_i32, %c0_i32_0 : i32, i32
  }
  func.func @transform_14(%arg0: i32, %arg1: i32) -> (i32, i32, i32) {
    %c0_i32 = arith.constant 0 : i32
    %c0_i32_0 = arith.constant 0 : i32
    %c0_i32_1 = arith.constant 0 : i32
    return %arg0, %c0_i32, %c0_i32_0 : i32, i32, i32
  }
}

</mosaic_0001>

<bundles_post_ra>
// kernel: transformer_encoder.2
= control target key start
LH: loop header
LB: loop body
LE: loop exit
PB: predicated region body
PF: predicated region fallthrough
CT: control target
= control target key end

     0   :  { %s1640_s29 = smov 0   ;;  %s1642_s30 = smov 0   ;;  %s1947_s0 = inlined_call_operand.vmem [shape: f32[2,8,64], index: 0, kind: input, shape index: {}]   ;;  %s1948_s1 = inlined_call_operand.vmem [shape: f32[8,8], index: 1, kind: input, shape index: {}]   ;;  %s1949_s2 = inlined_call_operand.vmem [shape: f32[2,64,96], index: 2, kind: input, shape index: {}]   ;;  %s1950_s3 = inlined_call_operand.vmem [shape: f32[2,1,96], index: 3, kind: input, shape index: {}]   ;;  %s1951_s4 = inlined_call_operand.vmem [shape: f32[2,32,64], index: 4, kind: input, shape index: {}]   ;;  %s1952_s5 = inlined_call_operand.vmem [shape: f32[1,64], index: 5, kind: input, shape index: {}]   ;;  %s1953_s6 = inlined_call_operand.vmem [shape: f32[1,64], index: 6, kind: input, shape index: {}]   ;;  %s1954_s7 = inlined_call_operand.vmem [shape: f32[1,64], index: 7, kind: input, shape index: {}]   ;;  %s1955_s8 = inlined_call_operand.vmem [shape: f32[64,256], index: 8, kind: input, shape index: {}]   ;;  %s1956_s9 = inlined_call_operand.vmem [shape: f32[1,256], index: 9, kind: input, shape index: {}]   ;;  %s1957_s10 = inlined_call_operand.vmem [shape: f32[256,64], index: 10, kind: input, shape index: {}]   ;;  %s1958_s11 = inlined_call_operand.vmem [shape: f32[1,64], index: 11, kind: input, shape index: {}]   ;;  %s1959_s12 = inlined_call_operand.vmem [shape: f32[1,64], index: 12, kind: input, shape index: {}]   ;;  %s1960_s13 = inlined_call_operand.vmem [shape: f32[1,64], index: 13, kind: input, shape index: {}]   ;;  %s1961_s14 = inlined_call_operand.vmem [shape: f32[2,8,64], index: 14, kind: output, shape index: {}]  }
   0x1   :  { %1965 = sst [smem:[#allocation8_spill]] %s1947_s0  ;;  %s1644_s15 = smov 0  }
   0x2   :  { %1966 = sst [smem:[#allocation9_spill]] %s1960_s13  ;;  %s1646_s16 = smov 0  }
   0x3   :  { %s1648_s17 = smov 0  }
   0x4 LB: > { %1967 = sst [smem:[#allocation3_spill]] %s1548_s15  ;;  %s33_s18 = sadd.s32 1, %s1548_s15  ;;  %s1556_s17 = sphi %s1648_s17, %s24_s17   ;;  %s1552_s16 = sphi %s1646_s16, %s1978_s16   ;;  %s1548_s15 = sphi %s1644_s15, %s1977_s15   ;;  %s1544_s30 = sphi %s1642_s30, %s1976_s30   ;;  %s1540_s29 = sphi %s1640_s29, %s1975_s29  }
   0x5   : > { %1968 = sst [smem:[#allocation4_spill]] %s1552_s16  ;;  %s36_s19 = sadd.s32 1, %s1552_s16 }
   0x6   : > { %1969 = sst [smem:[#allocation5_spill]] %s1556_s17  ;;  %p34_p0 = scmp.ge.s32.totalorder %s33_s18, 2 }
   0x7   : > { %p1274_p1 = scmp.ge.s32.totalorder %s1556_s17, 1  ;;  %p451_p2 = scmp.lt.s32.totalorder %s1556_s17, 5 }
   0x8   : > { %s1980_s18 = smov (%p34_p0, %s33_s18), 0  ;;  %s1982_s19 = smov (!%p34_p0, %s36_s19), %s1552_s16 }
   0x9   : > { %1970 = sst [smem:[#allocation6_spill]] %s1980_s18  ;;  %p452_p3 = pnand %p1274_p1, %p451_p2 }
   0xa   : > { %p38_p4 = scmp.ge.s32.totalorder %s1982_s19, 2  ;;  %p508_p5 = scmp.lt.s32.totalorder (!%p452_p3), %s1544_s30, 1 }
   0xb   : > { %455 = sbr.rel (%p452_p3) target bundleno = 2138 (0x85a), region = 76  ;;  %p512_p6 = scmp.lt.s32.totalorder (!%p452_p3), %s1540_s29, 1 }
   0xc   : > { %s1984_s19 = smov (%p38_p4, %s1982_s19), 0  ;;  %s1972_s0 = sld [smem:[#allocation8_spill]] (!%p452_p3) }
   0xd   : > { %1971 = sst [smem:[#allocation7_spill]] %s1984_s19  ;;  %p1281_p7 = scmp.ne.s32.totalorder (!%p452_p3), %s1540_s29, 0 }
  0x12   : > { %s1986_s30 = smov (!%p508_p5, %s1544_s30), 1  ;;  %533 = sbr.rel (%p1281_p7) target bundleno = 25 (0x19), region = 80 }
  0x13   : > { %s1674_s20 = scalar_select %p512_p6, %s1540_s29, 1 }
  0x14   : > { %s1275_s21 = sshll.u32 %s1986_s30, 3  ;;  %vm534_vm0 = vcmask (!%p1281_p7), 523264   ;;  %v1558_v1 = vmov (!%p1281_p7), 0.0  }
  0x15   : > { %s511_s24 = scalar_lea.vmem %s1972_s0, %s1275_s21  ;;  %s1298_s25 = sshll.u32 %s1674_s20, 6  ;;  %535 = vst.msk [vmem:[#allocation2] sm:$0xff] (!%p1281_p7), %vm534_vm0, %v1558_v1 }
  0x16   : > { %s1683_s28 = scalar_lea.vmem %s1949_s2, %s1298_s25  ;;  %s519_s16 = scalar_lea.vmem %s1950_s3, %s1674_s20  ;;  %v1689_v0 = vld [vmem:[%s511_s24] sm:$0xff] }
  0x17   : > { %s1299_s15 = sshll.u32 %s1674_s20, 5  ;;  %s1695_s30 = scalar_lea.vmem %s1961_s14, %s1275_s21 }
  0x18   : > { %s1700_s0 = scalar_lea.vmem %s1951_s4, %s1299_s15 }
  0x19 PF: > { %v536_v2 = vld [vmem:[%s1683_s28] sm:$0xff]  ;;  %v537_v3 = vld [vmem:[%s1683_s28 + $0x8] sm:$0xff]  ;;  %v538_v4 = vld [vmem:[%s1683_s28 + $0x10] sm:$0xff]  ;;  %v1559_v5 = vmov 0.0|0.0   ;;  %vm1560_vm1 = vmmov 0   ;;  %v1561_v8 = vmov 0.0  }
  0x1a   : > { %1393 = vmatprep.subr.bf16.mxu0 %v1559_v5  ;;  %v1394_v6 = vpack.c.bf16 %v537_v3, %v536_v2  ;;  %v539_v7 = vld [vmem:[%s1683_s28 + $0x18] sm:$0xff]  ;;  %1369 = vmatprep.mubr.msk.f32.mxu0 %vm1560_vm1, %v1561_v8  ;;  %v540_v10 = vld [vmem:[%s1683_s28 + $0x20] sm:$0xff]  ;;  %v541_v11 = vld [vmem:[%s1683_s28 + $0x28] sm:$0xff]  ;;  %vm551_vm2 = vcmask 523264   ;;  %s1562_s17 = smov 96   ;;  %vm629_vm3 = vcmask 261120  }
  0x1b   : > { %1372 = vmatprep.subr.mxu1 %v1561_v8  ;;  %1374 = vmatprep.mubr.msk.f32.mxu1 %vm1560_vm1, %v1561_v8  ;;  %v1397_v9 = vpack.c.bf16 %v539_v7, %v538_v4  ;;  %v1400_v12 = vpack.c.bf16 %v541_v11, %v540_v10  ;;  %v542_v13 = vld [vmem:[%s1683_s28 + $0x30] sm:$0xff]  ;;  %v543_v14 = vld [vmem:[%s1683_s28 + $0x38] sm:$0xff]  ;;  %v1282_v16 = vld [vmem:[%s519_s16] ss:$0 sm:$0xff]  ;;  %vm704_vm4 = vcmask 64512   ;;  %s1563_s16 = smov 64  }
  0x1c   : > { %1395 = vmatpush3.bf16.msra.mxu0 %v1394_v6  ;;  %v1403_v15 = vpack.c.bf16 %v543_v14, %v542_v13  ;;  %v625_v21 = vld [vmem:[%s1948_s1] sm:$0xff]  ;;  %v794_v34 = vld [vmem:[%s1700_s0 + $0x8] sm:$0xff]  ;;  %v795_v38 = vld [vmem:[%s1700_s0 + $0x10] sm:$0xff]  ;;  %p1288_p8 = scmp.ne.s32.totalorder %s1540_s29, 1 }
  0x1d   : > { %1396 = vmatprep.subr.bf16.mxu0 %v1559_v5  ;;  %v793_v33 = vld [vmem:[%s1700_s0] sm:$0xff]  ;;  %v796_v39 = vld [vmem:[%s1700_s0 + $0x18] sm:$0xff]  ;;  %v919_v54 = vld [vmem:[%s1955_s8 + $0x8] sm:$0xff] (!%p1288_p8)  ;;  %v1564_v3 = vmov (!%p1288_p8), 0.0   ;;  %s1973_s28 = sld [smem:[#allocation9_spill]] (!%p1288_p8) }
  0x1e   : > { %v1406_v36 = vpack.c.bf16 %v794_v34, %v793_v33  ;;  %v1409_v40 = vpack.c.bf16 %v796_v39, %v795_v38  ;;  %v792_v43 = vld [vmem:[#allocation2] sm:$0xff]  ;;  %v921_v55 = vld [vmem:[%s1955_s8 + $0x18] sm:$0xff] (!%p1288_p8)  ;;  %v920_v58 = vld [vmem:[%s1955_s8 + $0x10] sm:$0xff] (!%p1288_p8) }
  0x1f   : > { %v1289_v48 = vld [vmem:[%s1952_s5] ss:$0 sm:$0xff] (!%p1288_p8)  ;;  %v1411_v56 = vpack.c.bf16 (!%p1288_p8), %v921_v55, %v919_v54  ;;  %v923_v60 = vld [vmem:[%s1955_s8 + $0x28] sm:$0xff] (!%p1288_p8)  ;;  %v925_v61 = vld [vmem:[%s1955_s8 + $0x38] sm:$0xff] (!%p1288_p8) }
  0x20   : > { %1398 = vmatpush3.bf16.msra.mxu0 %v1397_v9  ;;  %v918_v57 = vld [vmem:[%s1955_s8] sm:$0xff] (!%p1288_p8)  ;;  %v1415_v63 = vpack.c.bf16 (!%p1288_p8), %v925_v61, %v923_v60  ;;  %v927_v1 = vld [vmem:[%s1955_s8 + $0x48] sm:$0xff] (!%p1288_p8)  ;;  %v929_v2 = vld [vmem:[%s1955_s8 + $0x58] sm:$0xff] (!%p1288_p8) }
  0x21   : > { %1399 = vmatprep.subr.bf16.mxu0 %v1559_v5  ;;  %v1413_v59 = vpack.c.bf16 (!%p1288_p8), %v920_v58, %v918_v57  ;;  %v922_v62 = vld [vmem:[%s1955_s8 + $0x20] sm:$0xff] (!%p1288_p8)  ;;  %v928_v7 = vld [vmem:[%s1955_s8 + $0x50] sm:$0xff] (!%p1288_p8)  ;;  %v933_v9 = vld [vmem:[%s1955_s8 + $0x78] sm:$0xff] (!%p1288_p8) }
  0x22   : > { %v926_v6 = vld [vmem:[%s1955_s8 + $0x40] sm:$0xff] (!%p1288_p8)  ;;  %v932_v13 = vld [vmem:[%s1955_s8 + $0x70] sm:$0xff] (!%p1288_p8)  ;;  %v1055_v55 = vld [vmem:[%s1957_s10 + $0xc8] sm:$0xff] (!%p1288_p8) }
  0x23   : > { %v1421_v10 = vpack.c.bf16 (!%p1288_p8), %v928_v7, %v926_v6  ;;  %v1054_v54 = vld [vmem:[%s1957_s10 + $0xc0] sm:$0xff] (!%p1288_p8)  ;;  %v1039_v58 = vld [vmem:[%s1957_s10 + $0x48] sm:$0xff] (!%p1288_p8)  ;;  %v1056_v60 = vld [vmem:[%s1957_s10 + $0xd0] sm:$0xff] (!%p1288_p8) }
  0x24   : > { %1401 = vmatpush3.bf16.msra.mxu0 %v1400_v12  ;;  %v930_v12 = vld [vmem:[%s1955_s8 + $0x60] sm:$0xff] (!%p1288_p8)  ;;  %v1057_v61 = vld [vmem:[%s1957_s10 + $0xd8] sm:$0xff] (!%p1288_p8)  ;;  %v1043_v6 = vld [vmem:[%s1957_s10 + $0x68] sm:$0xff] (!%p1288_p8) }
  0x25   : > { %1402 = vmatprep.subr.bf16.mxu0 %v1559_v5  ;;  %v1425_v14 = vpack.c.bf16 (!%p1288_p8), %v932_v13, %v930_v12  ;;  %v1038_v57 = vld [vmem:[%s1957_s10 + $0x40] sm:$0xff] (!%p1288_p8)  ;;  %v1045_v12 = vld [vmem:[%s1957_s10 + $0x78] sm:$0xff] (!%p1288_p8) }
  0x28   : > { %1404 = vmatpush3.bf16.msra.mxu0 %v1403_v15  ;;  %v1046_v15 = vld [vmem:[%s1957_s10 + $0x80] sm:$0xff] (!%p1288_p8) }
  0x29   : > { %1412 = vmatprep.subr.bf16.mxu0 (!%p1288_p8), %v1411_v56  ;;  %v1443_v56 = vpack.c.bf16 (!%p1288_p8), %v1055_v55, %v1054_v54 }
  0x2b   : > { %1370 = vmatmul.mubr.msk.f32.vlgmr.msra.gmra.mrb[0].mxu0 %vm551_vm2, %v1689_v0 }
  0x2c   : > { %1013 = vmatprep.mubr.f32.mxu0 (!%p1288_p8), %v1564_v3  ;;  %1414 = vmatpush1.bf16.msra.mxu0 (!%p1288_p8), %v1413_v59  ;;  %v1445_v59 = vpack.c.bf16 (!%p1288_p8), %v1039_v58, %v1038_v57  ;;  %v1059_v3 = vld [vmem:[%s1957_s10 + $0xe8] sm:$0xff] (!%p1288_p8) }
  0x2d   : > { %1416 = vmatprep.subr.bf16.mxu0 (!%p1288_p8), %v1415_v63  ;;  %v1040_v63 = vld [vmem:[%s1957_s10 + $0x50] sm:$0xff] (!%p1288_p8) }
  0xfe   : > { %v621_v17 = vpop.f32.mrb[0].mxu0 }
  0xff   : > { %v622_v18 = vadd.f32 %v1282_v16, %v621_v17  ;;  %v1371_v19 = vpop.f32.mrb[1].mxu0  ;;  %v1047_v16 = vld [vmem:[%s1957_s10 + $0x88] sm:$0xff] (!%p1288_p8)  ;;  %v1030_v17 = vld [vmem:[%s1957_s10] sm:$0xff] (!%p1288_p8) }
 0x100   : > { %v1031_v19 = vld [vmem:[%s1957_s10 + $0x8] sm:$0xff] (!%p1288_p8) }
 0x101   : > { %627 = vrot.lane.b32.xlu0 %v622_v18, %s1562_s17 }
 0x173   : > { %v628_v20 = vpop.permute.xlu0 %627 }
 0x174   : > { %1373 = vmatpush3.xpose.msk.msra.mxu1 %vm629_vm3, %v628_v20  ;;  %v1048_v20 = vld [vmem:[%s1957_s10 + $0x90] sm:$0xff] (!%p1288_p8) }
 0x175   : > { %1377 = vmatprep.subr.mxu1 %v1561_v8 }
 0x177   : > { %1375 = vmatmul.mubr.msk.f32.vlgmr.msra.gmra.mrb[0].mxu1 %vm629_vm3, %v622_v18 }
 0x178   : > { %1379 = vmatprep.mubr.msk.f32.mxu1 %vm1560_vm1, %v1561_v8 }
 0x24a   : > { %v700_v22 = vpop.f32.mrb[0].mxu1 }
 0x24b   : > { %v701_v23 = vadd.f32 %v700_v22, %v625_v21  ;;  %v1376_v24 = vpop.f32.mrb[1].mxu1  ;;  %v1049_v21 = vld [vmem:[%s1957_s10 + $0x98] sm:$0xff] (!%p1288_p8)  ;;  %v1429_v22 = vpack.c.bf16 (!%p1288_p8), %v1031_v19, %v1030_v17  ;;  %v934_v17 = vld [vmem:[%s1956_s9] sm:$0x3] (!%p1288_p8) }
 0x24c   : > { %v1032_v24 = vld [vmem:[%s1957_s10 + $0x10] sm:$0xff] (!%p1288_p8) }
 0x24d   : > { %v705_v25 = vsel %vm704_vm4, %v701_v23, -inf }
 0x24e   : > { %706 = vmax.xlane.f32.xlu0 %v705_v25  ;;  %v1033_v25 = vld [vmem:[%s1957_s10 + $0x18] sm:$0xff] (!%p1288_p8) }
 0x2db   : > { %v707_v26 = vpop.xlane.xlu0 %706 }
 0x2dc   : > { %v708_v27 = vsub.f32 %v701_v23, %v707_v26  ;;  %v1431_v23 = vpack.c.bf16 (!%p1288_p8), %v1049_v21, %v1048_v20  ;;  %v1050_v26 = vld [vmem:[%s1957_s10 + $0xa0] sm:$0xff] (!%p1288_p8) }
 0x2de   : > { %v709_v28 = vmul.f32 1.442695, %v708_v27  ;;  %v1051_v27 = vld [vmem:[%s1957_s10 + $0xa8] sm:$0xff] (!%p1288_p8) }
 0x2e0   : > { %1506 = vpow2.f32 %v709_v28  ;;  %v1433_v28 = vpack.c.bf16 (!%p1288_p8), %v1033_v25, %v1032_v24 }
 0x2ea   : > { %v1507_v29 = vpop.eup %1506 }
 0x2eb   : > { %v711_v30 = vsel %vm704_vm4, %v1507_v29, 0.0 }
 0x2ec   : > { %712 = vadd.xlane.f32.xlu1 %v711_v30  ;;  %v1034_v30 = vld [vmem:[%s1957_s10 + $0x20] sm:$0xff] (!%p1288_p8) }
 0x2fd   : > { %716 = vrot.lane.b32.xlu1 %v622_v18, %s1563_s16  ;;  %v1427_v18 = vpack.c.bf16 (!%p1288_p8), %v1047_v16, %v1046_v15 }
 0x379   : > { %v713_v31 = vpop.xlane.xlu1 %712 }
 0x37a   : > { %1508 = vrcp.f32 %v713_v31  ;;  %v1035_v31 = vld [vmem:[%s1957_s10 + $0x28] sm:$0xff] (!%p1288_p8) }
 0x37d   : > { %v717_v32 = vpop.permute.xlu1 %716 }
 0x37e   : > { %1378 = vmatpush3.msra.mxu1 %v717_v32  ;;  %v1437_v32 = vpack.c.bf16 (!%p1288_p8), %v1035_v31, %v1034_v30 }
 0x37f   : > { %1405 = vmatprep.subr.bf16.mxu1 %v1559_v5 }
 0x384   : > { %v1509_v35 = vpop.eup %1508 }
 0x385   : > { %v715_v37 = vmul.f32 %v1509_v35, %v1507_v29  ;;  %v1435_v29 = vpack.c.bf16 (!%p1288_p8), %v1051_v27, %v1050_v26 }
 0x387   : > { %1380 = vmatmul.mubr.msk.f32.vlgmr.msra.gmra.mrb[2].mxu1 %vm704_vm4, %v715_v37 }
 0x388   : > { %1407 = vmatpush3.bf16.msra.mxu1 %v1406_v36  ;;  %1390 = vmatprep.mubr.msk.f32.mxu1 %vm1560_vm1, %v1561_v8  ;;  %v931_v8 = vld [vmem:[%s1955_s8 + $0x68] sm:$0xff] (!%p1288_p8) }
 0x389   : > { %1408 = vmatprep.subr.bf16.mxu1 %v1559_v5  ;;  %v1419_v5 = vpack.c.bf16 (!%p1288_p8), %v929_v2, %v927_v1  ;;  %v1423_v11 = vpack.c.bf16 (!%p1288_p8), %v933_v9, %v931_v8  ;;  %v1058_v2 = vld [vmem:[%s1957_s10 + $0xe0] sm:$0xff] (!%p1288_p8)  ;;  %v1060_v8 = vld [vmem:[%s1957_s10 + $0xf0] sm:$0xff] (!%p1288_p8)  ;;  %v1061_v9 = vld [vmem:[%s1957_s10 + $0xf8] sm:$0xff] (!%p1288_p8) }
 0x38c   : > { %1410 = vmatpush3.bf16.msra.mxu1 %v1409_v40 }
 0x38d   : > { %1428 = vmatprep.subr.bf16.mxu1 (!%p1288_p8), %v1427_v18 }
 0x45a   : > { %v788_v41 = vpop.f32.mrb[2].mxu1 }
 0x45b   : > { %v1381_v42 = vpop.f32.mrb[3].mxu1  ;;  %1391 = vmatmul.mubr.msk.f32.vlgmr.msra.gmra.mrb[4].mxu1 %vm629_vm3, %v788_v41 }
 0x45c   : > { %1430 = vmatpush3.bf16.msra.mxu1 (!%p1288_p8), %v1429_v22 }
 0x45d   : > { %1432 = vmatprep.subr.bf16.mxu1 (!%p1288_p8), %v1431_v23 }
 0x460   : > { %1434 = vmatpush3.bf16.msra.mxu1 (!%p1288_p8), %v1433_v28 }
 0x461   : > { %1436 = vmatprep.subr.bf16.mxu1 (!%p1288_p8), %v1435_v29 }
 0x464   : > { %1438 = vmatpush3.bf16.msra.mxu1 (!%p1288_p8), %v1437_v32 }
 0x52b   : > { %875 = sbr.rel (%p1288_p8) target bundleno = 2138 (0x85a), region = 84 }
 0x52e   : > { %v866_v44 = vpop.f32.mrb[4].mxu1 }
 0x52f   : > { %v870_v45 = vadd.f32 %v866_v44, %v792_v43  ;;  %v1392_v46 = vpop.f32.mrb[5].mxu1  ;;  %v1290_v43 = vld [vmem:[%s1953_s6] ss:$0 sm:$0xff] (!%p1288_p8) }
 0x531   : > { %871 = vst.msk [vmem:[#allocation2] sm:$0xff] %vm551_vm2, %v870_v45  ;;  %v1291_v45 = vld [vmem:[%s1954_s7] ss:$0 sm:$0xff] (!%p1288_p8) }
 0x538   : > { %v876_v47 = vld [vmem:[#allocation2] sm:$0xff] }
 0x539   : > { %v884_v49 = vadd.f32 %v1289_v48, %v876_v47  ;;  %v1052_v48 = vld [vmem:[%s1957_s10 + $0xb0] sm:$0xff] }
 0x53b   : > { %v1753_v50 = vadd.f32 %v884_v49, %v1689_v0  ;;  %v924_v0 = vld [vmem:[%s1955_s8 + $0x30] sm:$0xff]  ;;  %v1053_v49 = vld [vmem:[%s1957_s10 + $0xb8] sm:$0xff] }
 0x53c   : > { %v1417_v4 = vpack.c.bf16 %v924_v0, %v922_v62  ;;  %v1447_v62 = vpack.c.bf16 %v1057_v61, %v1056_v60  ;;  %v1041_v0 = vld [vmem:[%s1957_s10 + $0x58] sm:$0xff] }
 0x53d   : > { %v888_v51 = vsel %vm551_vm2, %v1753_v50, 0.0  ;;  %v891_v52 = vmul.f32 %v1753_v50, %v1753_v50  ;;  %v1449_v1 = vpack.c.bf16 %v1041_v0, %v1040_v63 }
 0x53e   : > { %889 = vadd.xlane.f32.xlu0 %v888_v51  ;;  %1418 = vmatpush1.bf16.msra.mxu0 %v1417_v4  ;;  %v1036_v51 = vld [vmem:[%s1957_s10 + $0x30] sm:$0xff]  ;;  %v1451_v4 = vpack.c.bf16 %v1059_v3, %v1058_v2 }
 0x53f   : > { %v892_v53 = vsel %vm551_vm2, %v891_v52, 0.0  ;;  %1420 = vmatprep.subr.bf16.mxu0 %v1419_v5  ;;  %v1037_v52 = vld [vmem:[%s1957_s10 + $0x38] sm:$0xff]  ;;  %v1042_v5 = vld [vmem:[%s1957_s10 + $0x60] sm:$0xff] }
 0x540   : > { %v1453_v7 = vpack.c.bf16 %v1043_v6, %v1042_v5 }
 0x542   : > { %893 = vadd.xlane.f32.xlu0 %v892_v53  ;;  %1422 = vmatpush1.bf16.msra.mxu0 %v1421_v10  ;;  %v1441_v53 = vpack.c.bf16 %v1037_v52, %v1036_v51  ;;  %v1455_v10 = vpack.c.bf16 %v1061_v9, %v1060_v8 }
 0x543   : > { %1424 = vmatprep.subr.bf16.mxu0 %v1423_v11  ;;  %v1044_v11 = vld [vmem:[%s1957_s10 + $0x70] sm:$0xff] }
 0x544   : > { %v1457_v13 = vpack.c.bf16 %v1045_v12, %v1044_v11 }
 0x546   : > { %1426 = vmatpush1.bf16.msra.mxu0 %v1425_v14  ;;  %v936_v14 = vlaneseq }
 0x548   : > { %v937_v15 = vshrl.u32 %v936_v14, 7 }
 0x54a   : > { %v938_v16 = vsub.s32 0, %v937_v15  ;;  %v942_v18 = vsub.s32 1, %v937_v15 }
 0x54c   : > { %v939_v19 = vrot.slane %v934_v17, %v938_v16  ;;  %v943_v20 = vrot.slane %v934_v17, %v942_v18 }
 0x5cb   : > { %v890_v33 = vpop.xlane.xlu0 %889 }
 0x5cc   : > { %v895_v34 = vmul.f32 0.015625, %v890_v33 }
 0x5ce   : > { %v897_v36 = vmul.f32 %v895_v34, %v895_v34  ;;  %v900_v41 = vsub.f32 %v1753_v50, %v895_v34  ;;  %v1439_v50 = vpack.c.bf16 %v1053_v49, %v1052_v48 }
 0x5cf   : > { %v894_v35 = vpop.xlane.xlu0 %893 }
 0x5d0   : > { %v896_v37 = vmul.f32 0.015625, %v894_v35  ;;  %1440 = vmatprep.subr.bf16.mxu1 %v1439_v50 }
 0x5d1   : > { %1442 = vmatpush3.bf16.msra.mxu1 %v1441_v53 }
 0x5d2   : > { %v898_v38 = vsub.f32 %v896_v37, %v897_v36  ;;  %1444 = vmatprep.subr.bf16.mxu1 %v1443_v56  ;;  %v1293_v36 = vld [vmem:[%s1958_s11] ss:$0 sm:$0xff] }
 0x5d3   : > { %v1295_v56 = vld [vmem:[%s1973_s28] ss:$0 sm:$0xff] }
 0x5d4   : > { %v899_v39 = vmax.f32 %v898_v38, 0.0 }
 0x5d5   : > { %1446 = vmatpush3.bf16.msra.mxu1 %v1445_v59 }
 0x5d6   : > { %v901_v40 = vadd.f32 1e-12, %v899_v39  ;;  %1448 = vmatprep.subr.bf16.mxu1 %v1447_v62 }
 0x5d8   : > { %1510 = vrsqrt.f32 %v901_v40 }
 0x5d9   : > { %1450 = vmatpush3.bf16.msra.mxu1 %v1449_v1 }
 0x5da   : > { %1452 = vmatprep.subr.bf16.mxu1 %v1451_v4 }
 0x5dd   : > { %1454 = vmatpush3.bf16.msra.mxu1 %v1453_v7 }
 0x5de   : > { %1456 = vmatprep.subr.bf16.mxu1 %v1455_v10 }
 0x5e1   : > { %1458 = vmatpush3.bf16.msra.mxu1 %v1457_v13 }
 0x5e2   : > { %v1511_v42 = vpop.eup %1510 }
 0x5e3   : > { %v903_v44 = vmul.f32 %v1511_v42, %v900_v41 }
 0x5e5   : > { %v910_v46 = vmul.f32 %v1290_v43, %v903_v44 }
 0x5e7   : > { %v1851_v47 = vadd.f32 %v1291_v45, %v910_v46 }
 0x5e9   : > { %1292 = vmatmul.mubr.msk.f32.vlgmr.msra.gmra.mrb[0].mxu0 %vm551_vm2, %v1851_v47 }
 0x6bc   : > { %v1015_v21 = vpop.f32.mrb[0].mxu0 }
 0x6bd   : > { %v1016_v22 = vadd.f32 %v1015_v21, %v939_v19  ;;  %v1017_v23 = vpop.f32.mrb[1].mxu0 }
 0x6be   : > { %v1018_v24 = vadd.f32 %v1017_v23, %v943_v20 }
 0x6bf   : > { %v1022_v25 = vmul.f32 0.70710677, %v1016_v22  ;;  %v1020_v32 = vmul.f32 0.5, %v1016_v22 }
 0x6c0   : > { %v1023_v26 = vmul.f32 0.70710677, %v1018_v24  ;;  %v1021_v30 = vmul.f32 0.5, %v1018_v24 }
 0x6c1   : > { %1512 = verf.f32 %v1022_v25 }
 0x6c2   : > { %1514 = verf.f32 %v1023_v26 }
 0x6cb   : > { %v1513_v27 = vpop.eup %1512 }
 0x6cc   : > { %v1515_v28 = vpop.eup %1514  ;;  %v1026_v29 = vadd.f32 1.0, %v1513_v27 }
 0x6cd   : > { %v1027_v31 = vadd.f32 1.0, %v1515_v28 }
 0x6ce   : > { %v1028_v34 = vmul.f32 %v1026_v29, %v1020_v32 }
 0x6cf   : > { %v1029_v33 = vmul.f32 %v1027_v31, %v1021_v30 }
 0x6d1   : > { %1133 = vmatprep.mubr.f32.mxu1 %v1029_v33 }
 0x6d2   : > { %1134 = vmatmul.mubr.f32.vlgmr.msra.gmra.mrb[0].mxu1 %v1028_v34 }
 0x7a5   : > { %v1350_v35 = vpop.f32.mrb[0].mxu1 }
 0x7a6   : > { %v1351_v37 = vpop.f32.mrb[1].mxu1 }
 0x7a7   : > { %v1352_v38 = vadd.f32 %v1351_v37, %v1350_v35 }
 0x7a9   : > { %v1136_v39 = vadd.f32 %v1352_v38, %v1293_v36 }
 0x7ab   : > { %v1139_v40 = vadd.f32 %v1136_v39, %v1851_v47  ;;  %v1294_v47 = vld [vmem:[%s1959_s12] ss:$0 sm:$0xff] }
 0x7ad   : > { %v1142_v41 = vsel %vm551_vm2, %v1139_v40, 0.0  ;;  %v1145_v42 = vmul.f32 %v1139_v40, %v1139_v40 }
 0x7ae   : > { %1143 = vadd.xlane.f32.xlu1 %v1142_v41 }
 0x7af   : > { %v1146_v43 = vsel %vm551_vm2, %v1145_v42, 0.0 }
 0x7b2   : > { %1147 = vadd.xlane.f32.xlu1 %v1146_v43 }
 0x83b   : > { %v1144_v44 = vpop.xlane.xlu1 %1143 }
 0x83c   : > { %v1149_v45 = vmul.f32 0.015625, %v1144_v44 }
 0x83e   : > { %v1151_v48 = vmul.f32 %v1149_v45, %v1149_v45  ;;  %v1154_v53 = vsub.f32 %v1139_v40, %v1149_v45 }
 0x83f   : > { %v1148_v46 = vpop.xlane.xlu1 %1147 }
 0x840   : > { %v1150_v49 = vmul.f32 0.015625, %v1148_v46 }
 0x842   : > { %v1152_v50 = vsub.f32 %v1150_v49, %v1151_v48 }
 0x844   : > { %v1153_v51 = vmax.f32 %v1152_v50, 0.0 }
 0x846   : > { %v1155_v52 = vadd.f32 1e-12, %v1153_v51 }
 0x848   : > { %1516 = vrsqrt.f32 %v1155_v52 }
 0x852   : > { %v1517_v54 = vpop.eup %1516 }
 0x853   : > { %v1157_v55 = vmul.f32 %v1517_v54, %v1154_v53 }
 0x855   : > { %v1164_v57 = vmul.f32 %v1294_v47, %v1157_v55 }
 0x857   : > { %v1171_v58 = vadd.f32 %v1295_v56, %v1164_v57 }
 0x859   : > { %1172 = vst.msk [vmem:[%s1695_s30] sm:$0xff] %vm551_vm2, %v1171_v58 }
 0x85a PF: > { %s1974_s22 = sld [smem:[#allocation5_spill]]  ;;  %s1975_s29 = sld [smem:[#allocation3_spill]] }
 0x85b   : > { %s1976_s30 = sld [smem:[#allocation4_spill]]  ;;  %s1977_s15 = sld [smem:[#allocation6_spill]] }
 0x85c   : > { %s1978_s16 = sld [smem:[#allocation7_spill]] }
 0x860   : > { %s24_s17 = sadd.s32 1, %s1974_s22  }
 0x861   : > { %p21_p9 = scmp.ge.s32.totalorder %s24_s17, 6  }
 0x863   :  { %23 = sbr.rel (!%p21_p9) target bundleno = 4 (0x4), region = 123 }

// kernel: transformer_encoder.3
= control target key start
LH: loop header
LB: loop body
LE: loop exit
PB: predicated region body
PF: predicated region fallthrough
CT: control target
= control target key end

     0   :  { %s2138_s0 = inlined_call_operand.vmem [shape: f32[2,8,64], index: 0, kind: input, shape index: {}]   ;;  %s2139_s1 = inlined_call_operand.vmem [shape: f32[8,8], index: 1, kind: input, shape index: {}]   ;;  %s2140_s2 = inlined_call_operand.vmem [shape: f32[2,64,96], index: 2, kind: input, shape index: {}]   ;;  %s2141_s3 = inlined_call_operand.vmem [shape: f32[2,1,96], index: 3, kind: input, shape index: {}]   ;;  %s2142_s4 = inlined_call_operand.vmem [shape: f32[2,32,64], index: 4, kind: input, shape index: {}]   ;;  %s2143_s5 = inlined_call_operand.vmem [shape: f32[1,64], index: 5, kind: input, shape index: {}]   ;;  %s2144_s6 = inlined_call_operand.vmem [shape: f32[1,64], index: 6, kind: input, shape index: {}]   ;;  %s2145_s7 = inlined_call_operand.vmem [shape: f32[1,64], index: 7, kind: input, shape index: {}]   ;;  %s2146_s8 = inlined_call_operand.vmem [shape: f32[64,256], index: 8, kind: input, shape index: {}]   ;;  %s2147_s9 = inlined_call_operand.vmem [shape: f32[1,256], index: 9, kind: input, shape index: {}]   ;;  %s2148_s10 = inlined_call_operand.vmem [shape: f32[256,64], index: 10, kind: input, shape index: {}]   ;;  %s2149_s11 = inlined_call_operand.vmem [shape: f32[1,64], index: 11, kind: input, shape index: {}]   ;;  %s2150_s12 = inlined_call_operand.vmem [shape: f32[1,64], index: 12, kind: input, shape index: {}]   ;;  %s2151_s13 = inlined_call_operand.vmem [shape: f32[1,64], index: 13, kind: input, shape index: {}]   ;;  %s2152_s14 = inlined_call_operand.hbm [shape: f32[2,8,64], index: 14, kind: output, shape index: {}]  }
   0x1   :  { %2167 = sst [smem:[#allocation18_spill]] %s2151_s13 }
   0x2   :  { %2168 = sst [smem:[#allocation19_spill]] %s2152_s14 }
   0x3   :  { %19 = vsyncpa [#allocation4], 0 }
   0x4   :  { %21 = vsyncpa [#allocation4 + $0x1], 0  ;;  %s1750_s29 = smov 0   ;;  %s1752_s30 = smov 0  }
   0x5   :  { %s1754_s15 = smov 0   ;;  %s1756_s16 = smov 0  }
   0x6   :  { %s1758_s17 = smov 0   ;;  %s1760_s18 = smov 0  }
   0x7   :  { %s1762_s19 = smov 0   ;;  %s1764_s20 = smov 0  }
   0x8 LB: > { %2169 = sst [smem:[#allocation6_spill]] %s1637_s29  ;;  %s1290_s21 = sadd.s32 4294967295, %s1665_s20   ;;  %s1665_s20 = sphi %s1764_s20, %s27_s20   ;;  %s1661_s19 = sphi %s1762_s19, %s2198_s19   ;;  %s1657_s18 = sphi %s1760_s18, %s2197_s18   ;;  %s1653_s17 = sphi %s1758_s17, %s2196_s17   ;;  %s1649_s16 = sphi %s1756_s16, %s2195_s16   ;;  %s1645_s15 = sphi %s1754_s15, %s2194_s15   ;;  %s1641_s30 = sphi %s1752_s30, %s2193_s30   ;;  %s1637_s29 = sphi %s1750_s29, %s2192_s29  }
   0x9   : > { %2170 = sst [smem:[#allocation7_spill]] %s1641_s30  ;;  %s1291_s22 = sadd.s32 4294967294, %s1665_s20  }
   0xa   : > { %2171 = sst [smem:[#allocation8_spill]] %s1645_s15  ;;  %s36_s23 = sadd.s32 1, %s1657_s18 }
   0xb   : > { %2172 = sst [smem:[#allocation9_spill]] %s1653_s17  ;;  %p37_p0 = scmp.ge.s32.totalorder %s36_s23, 2 }
   0xc   : > { %2173 = sst [smem:[#allocation10_spill]] %s1657_s18  ;;  %s39_s24 = sadd.s32 1, %s1661_s19 }
   0xd   : > { %2174 = sst [smem:[#allocation11_spill]] %s1661_s19  ;;  %p370_p1 = scmp.ne.s32.totalorder %s1645_s15, %s1641_s30 }
   0xe   : > { %2175 = sst [smem:[#allocation12_spill]] %s1665_s20  ;;  %p371_p2 = scmp.eq.s32.totalorder %s1290_s21, 3 }
   0xf   : > { %s2200_s23 = smov (%p37_p0, %s36_s23), 0  ;;  %s2202_s24 = smov (!%p37_p0, %s39_s24), %s1661_s19 }
  0x10   : > { %2176 = sst [smem:[#allocation13_spill]] %s2200_s23  ;;  %p1799_p3 = por %p371_p2, %p370_p1 }
  0x11   : > { %p376_p4 = scmp.ne.s32.totalorder %s1641_s30, %s1637_s29  ;;  %p41_p5 = scmp.ge.s32.totalorder %s2202_s24, 2 }
  0x12   : > { %s2177_s25 = scalar_select %p1799_p3, 1, 0 }
  0x13   : > { %p377_p6 = scmp.eq.s32.totalorder %s1291_s22, 3  ;;  %p1294_p7 = scmp.ge.s32.totalorder %s1665_s20, 1 }
  0x14   : > { %2178 = sst [smem:[#allocation14_spill]] %s2177_s25  ;;  %p454_p8 = scmp.lt.s32.totalorder %s1665_s20, 5 }
  0x15   : > { %s2204_s24 = smov (%p41_p5, %s2202_s24), 0  ;;  %p1809_p9 = por %p377_p6, %p376_p4 }
  0x16   : > { %2179 = sst [smem:[#allocation15_spill]] %s2204_s24  ;;  %p455_p10 = pnand %p1294_p7, %p454_p8 }
  0x17   : > { %s2180_s26 = scalar_select %p1809_p9, 1, 0 }
  0x18   : > { %s357_s27 = ssub.s32 %s1661_s19, %s2204_s24  ;;  %s360_s28 = sadd.s32 1, %s1645_s15 }
  0x19   : > { %2181 = sst [smem:[#allocation16_spill]] %s2180_s26  ;;  %p358_p11 = scmp.eq.s32.totalorder %s357_s27, 0 }
  0x1a   : > { %458 = sbr.rel (%p455_p10) target bundleno = 2181 (0x885), region = 76  ;;  %s2161_s22 = sand.u32 (!%p455_p10), 1, %s1641_s30  }
  0x1b   : > { %s1817_s21 = scalar_select %p358_p11, %s1645_s15, %s360_s28  }
  0x1c   : > { %p512_p12 = scmp.lt.s32.totalorder (!%p455_p10), %s1653_s17, 1  ;;  %s1823_s23 = sshll.u32 (!%p455_p10), %s2161_s22, 3 }
  0x1d   : > { %2182 = sst [smem:[#allocation17_spill]] %s1817_s21  ;;  %p516_p13 = scmp.lt.s32.totalorder (!%p455_p10), %s1649_s16, 1 }
  0x1e   : > { %s511_s19 = scalar_lea.vmem (!%p455_p10), [#allocation3], %s1823_s23  ;;  %p1301_p0 = scmp.ne.s32.totalorder (!%p455_p10), %s1649_s16, 0 }
  0x21   : > { %s513_s18 = scalar_select %p512_p12, %s1653_s17, 1 }
  0x22   : > { %s1828_s24 = scalar_select %p516_p13, %s1649_s16, 1 }
  0x23   : > { %s1296_s27 = sshll.u32 %s513_s18, 3  ;;  %533 = sbr.rel (%p1301_p0) target bundleno = 42 (0x2a), region = 80  ;;  %vm534_vm0 = vcmask (!%p1301_p0), 523264   ;;  %v1667_v1 = vmov (!%p1301_p0), 0.0  }
  0x24   : > { %s515_s21 = scalar_lea.vmem %s2138_s0, %s1296_s27  ;;  %s1320_s15 = sshll.u32 %s1828_s24, 6  ;;  %535 = vst.msk [vmem:[#allocation2] sm:$0xff] (!%p1301_p0), %vm534_vm0, %v1667_v1 }
  0x25   : > { %s1837_s20 = scalar_lea.vmem %s2140_s2, %s1320_s15  ;;  %s523_s25 = scalar_lea.vmem %s2141_s3, %s1828_s24  ;;  %v1843_v0 = vld [vmem:[%s515_s21] sm:$0xff] }
  0x26   : > { %s1321_s30 = sshll.u32 %s1828_s24, 5 }
  0x27   : > { %s1849_s18 = scalar_lea.vmem %s2142_s4, %s1321_s30 }
  0x2a PF: > { %v536_v2 = vld [vmem:[%s1837_s20] sm:$0xff]  ;;  %v537_v3 = vld [vmem:[%s1837_s20 + $0x8] sm:$0xff]  ;;  %v538_v4 = vld [vmem:[%s1837_s20 + $0x10] sm:$0xff]  ;;  %v1668_v5 = vmov 0.0|0.0   ;;  %vm1669_vm1 = vmmov 0   ;;  %v1670_v8 = vmov 0.0  }
  0x2b   : > { %1415 = vmatprep.subr.bf16.mxu0 %v1668_v5  ;;  %v1416_v6 = vpack.c.bf16 %v537_v3, %v536_v2  ;;  %v539_v7 = vld [vmem:[%s1837_s20 + $0x18] sm:$0xff]  ;;  %1391 = vmatprep.mubr.msk.f32.mxu0 %vm1669_vm1, %v1670_v8  ;;  %v540_v10 = vld [vmem:[%s1837_s20 + $0x20] sm:$0xff]  ;;  %v541_v11 = vld [vmem:[%s1837_s20 + $0x28] sm:$0xff]  ;;  %vm551_vm2 = vcmask 523264   ;;  %s1671_s29 = smov 96   ;;  %vm629_vm3 = vcmask 261120  }
  0x2c   : > { %1394 = vmatprep.subr.mxu1 %v1670_v8  ;;  %1396 = vmatprep.mubr.msk.f32.mxu1 %vm1669_vm1, %v1670_v8  ;;  %v1419_v9 = vpack.c.bf16 %v539_v7, %v538_v4  ;;  %v1422_v12 = vpack.c.bf16 %v541_v11, %v540_v10  ;;  %v542_v13 = vld [vmem:[%s1837_s20 + $0x30] sm:$0xff]  ;;  %v543_v14 = vld [vmem:[%s1837_s20 + $0x38] sm:$0xff]  ;;  %v1302_v16 = vld [vmem:[%s523_s25] ss:$0 sm:$0xff]  ;;  %vm704_vm4 = vcmask 64512   ;;  %s1672_s17 = smov 64  }
  0x2d   : > { %1417 = vmatpush3.bf16.msra.mxu0 %v1416_v6  ;;  %v1425_v15 = vpack.c.bf16 %v543_v14, %v542_v13  ;;  %v625_v21 = vld [vmem:[%s2139_s1] sm:$0xff]  ;;  %v794_v34 = vld [vmem:[%s1849_s18 + $0x8] sm:$0xff]  ;;  %v795_v38 = vld [vmem:[%s1849_s18 + $0x10] sm:$0xff]  ;;  %p1308_p1 = scmp.ne.s32.totalorder %s1649_s16, 1 }
  0x2e   : > { %1418 = vmatprep.subr.bf16.mxu0 %v1668_v5  ;;  %v793_v33 = vld [vmem:[%s1849_s18] sm:$0xff]  ;;  %v796_v39 = vld [vmem:[%s1849_s18 + $0x18] sm:$0xff]  ;;  %v919_v54 = vld [vmem:[%s2146_s8 + $0x8] sm:$0xff] (!%p1308_p1)  ;;  %v1673_v3 = vmov (!%p1308_p1), 0.0   ;;  %s2183_s15 = sld [smem:[#allocation18_spill]] (!%p1308_p1) }
  0x2f   : > { %v1428_v36 = vpack.c.bf16 %v794_v34, %v793_v33  ;;  %v1431_v40 = vpack.c.bf16 %v796_v39, %v795_v38  ;;  %v792_v43 = vld [vmem:[#allocation2] sm:$0xff]  ;;  %v921_v55 = vld [vmem:[%s2146_s8 + $0x18] sm:$0xff] (!%p1308_p1)  ;;  %v920_v58 = vld [vmem:[%s2146_s8 + $0x10] sm:$0xff] (!%p1308_p1) }
  0x30   : > { %v1309_v48 = vld [vmem:[%s2143_s5] ss:$0 sm:$0xff] (!%p1308_p1)  ;;  %v1433_v56 = vpack.c.bf16 (!%p1308_p1), %v921_v55, %v919_v54  ;;  %v923_v60 = vld [vmem:[%s2146_s8 + $0x28] sm:$0xff] (!%p1308_p1)  ;;  %v925_v61 = vld [vmem:[%s2146_s8 + $0x38] sm:$0xff] (!%p1308_p1) }
  0x31   : > { %1420 = vmatpush3.bf16.msra.mxu0 %v1419_v9  ;;  %v918_v57 = vld [vmem:[%s2146_s8] sm:$0xff] (!%p1308_p1)  ;;  %v1437_v63 = vpack.c.bf16 (!%p1308_p1), %v925_v61, %v923_v60  ;;  %v927_v1 = vld [vmem:[%s2146_s8 + $0x48] sm:$0xff] (!%p1308_p1)  ;;  %v929_v2 = vld [vmem:[%s2146_s8 + $0x58] sm:$0xff] (!%p1308_p1) }
  0x32   : > { %1421 = vmatprep.subr.bf16.mxu0 %v1668_v5  ;;  %v1435_v59 = vpack.c.bf16 (!%p1308_p1), %v920_v58, %v918_v57  ;;  %v922_v62 = vld [vmem:[%s2146_s8 + $0x20] sm:$0xff] (!%p1308_p1)  ;;  %v928_v7 = vld [vmem:[%s2146_s8 + $0x50] sm:$0xff] (!%p1308_p1)  ;;  %v933_v9 = vld [vmem:[%s2146_s8 + $0x78] sm:$0xff] (!%p1308_p1) }
  0x33   : > { %v926_v6 = vld [vmem:[%s2146_s8 + $0x40] sm:$0xff] (!%p1308_p1)  ;;  %v932_v13 = vld [vmem:[%s2146_s8 + $0x70] sm:$0xff] (!%p1308_p1)  ;;  %v1055_v55 = vld [vmem:[%s2148_s10 + $0xc8] sm:$0xff] (!%p1308_p1) }
  0x34   : > { %v1443_v10 = vpack.c.bf16 (!%p1308_p1), %v928_v7, %v926_v6  ;;  %v1054_v54 = vld [vmem:[%s2148_s10 + $0xc0] sm:$0xff] (!%p1308_p1)  ;;  %v1039_v58 = vld [vmem:[%s2148_s10 + $0x48] sm:$0xff] (!%p1308_p1)  ;;  %v1056_v60 = vld [vmem:[%s2148_s10 + $0xd0] sm:$0xff] (!%p1308_p1) }
  0x35   : > { %1423 = vmatpush3.bf16.msra.mxu0 %v1422_v12  ;;  %v930_v12 = vld [vmem:[%s2146_s8 + $0x60] sm:$0xff] (!%p1308_p1)  ;;  %v1057_v61 = vld [vmem:[%s2148_s10 + $0xd8] sm:$0xff] (!%p1308_p1)  ;;  %v1043_v6 = vld [vmem:[%s2148_s10 + $0x68] sm:$0xff] (!%p1308_p1) }
  0x36   : > { %1424 = vmatprep.subr.bf16.mxu0 %v1668_v5  ;;  %v1447_v14 = vpack.c.bf16 (!%p1308_p1), %v932_v13, %v930_v12  ;;  %v1038_v57 = vld [vmem:[%s2148_s10 + $0x40] sm:$0xff] (!%p1308_p1)  ;;  %v1045_v12 = vld [vmem:[%s2148_s10 + $0x78] sm:$0xff] (!%p1308_p1) }
  0x39   : > { %1426 = vmatpush3.bf16.msra.mxu0 %v1425_v15  ;;  %v1046_v15 = vld [vmem:[%s2148_s10 + $0x80] sm:$0xff] (!%p1308_p1) }
  0x3a   : > { %1434 = vmatprep.subr.bf16.mxu0 (!%p1308_p1), %v1433_v56  ;;  %v1465_v56 = vpack.c.bf16 (!%p1308_p1), %v1055_v55, %v1054_v54 }
  0x3c   : > { %1392 = vmatmul.mubr.msk.f32.vlgmr.msra.gmra.mrb[0].mxu0 %vm551_vm2, %v1843_v0 }
  0x3d   : > { %1013 = vmatprep.mubr.f32.mxu0 (!%p1308_p1), %v1673_v3  ;;  %1436 = vmatpush1.bf16.msra.mxu0 (!%p1308_p1), %v1435_v59  ;;  %v1467_v59 = vpack.c.bf16 (!%p1308_p1), %v1039_v58, %v1038_v57  ;;  %v1059_v3 = vld [vmem:[%s2148_s10 + $0xe8] sm:$0xff] (!%p1308_p1) }
  0x3e   : > { %1438 = vmatprep.subr.bf16.mxu0 (!%p1308_p1), %v1437_v63  ;;  %v1040_v63 = vld [vmem:[%s2148_s10 + $0x50] sm:$0xff] (!%p1308_p1) }
 0x10f   : > { %v621_v17 = vpop.f32.mrb[0].mxu0 }
 0x110   : > { %v622_v18 = vadd.f32 %v1302_v16, %v621_v17  ;;  %v1393_v19 = vpop.f32.mrb[1].mxu0  ;;  %v1047_v16 = vld [vmem:[%s2148_s10 + $0x88] sm:$0xff] (!%p1308_p1)  ;;  %v1030_v17 = vld [vmem:[%s2148_s10] sm:$0xff] (!%p1308_p1) }
 0x111   : > { %v1031_v19 = vld [vmem:[%s2148_s10 + $0x8] sm:$0xff] (!%p1308_p1) }
 0x112   : > { %627 = vrot.lane.b32.xlu0 %v622_v18, %s1671_s29 }
 0x184   : > { %v628_v20 = vpop.permute.xlu0 %627 }
 0x185   : > { %1395 = vmatpush3.xpose.msk.msra.mxu1 %vm629_vm3, %v628_v20  ;;  %v1048_v20 = vld [vmem:[%s2148_s10 + $0x90] sm:$0xff] (!%p1308_p1) }
 0x186   : > { %1399 = vmatprep.subr.mxu1 %v1670_v8 }
 0x188   : > { %1397 = vmatmul.mubr.msk.f32.vlgmr.msra.gmra.mrb[0].mxu1 %vm629_vm3, %v622_v18 }
 0x189   : > { %1401 = vmatprep.mubr.msk.f32.mxu1 %vm1669_vm1, %v1670_v8 }
 0x25b   : > { %v700_v22 = vpop.f32.mrb[0].mxu1 }
 0x25c   : > { %v701_v23 = vadd.f32 %v700_v22, %v625_v21  ;;  %v1398_v24 = vpop.f32.mrb[1].mxu1  ;;  %v1049_v21 = vld [vmem:[%s2148_s10 + $0x98] sm:$0xff] (!%p1308_p1)  ;;  %v1451_v22 = vpack.c.bf16 (!%p1308_p1), %v1031_v19, %v1030_v17  ;;  %v934_v17 = vld [vmem:[%s2147_s9] sm:$0x3] (!%p1308_p1) }
 0x25d   : > { %v1032_v24 = vld [vmem:[%s2148_s10 + $0x10] sm:$0xff] (!%p1308_p1) }
 0x25e   : > { %v705_v25 = vsel %vm704_vm4, %v701_v23, -inf }
 0x25f   : > { %706 = vmax.xlane.f32.xlu0 %v705_v25  ;;  %v1033_v25 = vld [vmem:[%s2148_s10 + $0x18] sm:$0xff] (!%p1308_p1) }
 0x2ec   : > { %v707_v26 = vpop.xlane.xlu0 %706 }
 0x2ed   : > { %v708_v27 = vsub.f32 %v701_v23, %v707_v26  ;;  %v1453_v23 = vpack.c.bf16 (!%p1308_p1), %v1049_v21, %v1048_v20  ;;  %v1050_v26 = vld [vmem:[%s2148_s10 + $0xa0] sm:$0xff] (!%p1308_p1) }
 0x2ef   : > { %v709_v28 = vmul.f32 1.442695, %v708_v27  ;;  %v1051_v27 = vld [vmem:[%s2148_s10 + $0xa8] sm:$0xff] (!%p1308_p1) }
 0x2f1   : > { %1559 = vpow2.f32 %v709_v28  ;;  %v1455_v28 = vpack.c.bf16 (!%p1308_p1), %v1033_v25, %v1032_v24 }
 0x2fb   : > { %v1560_v29 = vpop.eup %1559 }
 0x2fc   : > { %v711_v30 = vsel %vm704_vm4, %v1560_v29, 0.0 }
 0x2fd   : > { %712 = vadd.xlane.f32.xlu1 %v711_v30  ;;  %v1034_v30 = vld [vmem:[%s2148_s10 + $0x20] sm:$0xff] (!%p1308_p1) }
 0x30e   : > { %716 = vrot.lane.b32.xlu1 %v622_v18, %s1672_s17  ;;  %v1449_v18 = vpack.c.bf16 (!%p1308_p1), %v1047_v16, %v1046_v15 }
 0x38a   : > { %v713_v31 = vpop.xlane.xlu1 %712 }
 0x38b   : > { %1561 = vrcp.f32 %v713_v31  ;;  %v1035_v31 = vld [vmem:[%s2148_s10 + $0x28] sm:$0xff] (!%p1308_p1) }
 0x38e   : > { %v717_v32 = vpop.permute.xlu1 %716 }
 0x38f   : > { %1400 = vmatpush3.msra.mxu1 %v717_v32  ;;  %v1459_v32 = vpack.c.bf16 (!%p1308_p1), %v1035_v31, %v1034_v30 }
 0x390   : > { %1427 = vmatprep.subr.bf16.mxu1 %v1668_v5 }
 0x395   : > { %v1562_v35 = vpop.eup %1561 }
 0x396   : > { %v715_v37 = vmul.f32 %v1562_v35, %v1560_v29  ;;  %v1457_v29 = vpack.c.bf16 (!%p1308_p1), %v1051_v27, %v1050_v26 }
 0x398   : > { %1402 = vmatmul.mubr.msk.f32.vlgmr.msra.gmra.mrb[2].mxu1 %vm704_vm4, %v715_v37 }
 0x399   : > { %1429 = vmatpush3.bf16.msra.mxu1 %v1428_v36  ;;  %1412 = vmatprep.mubr.msk.f32.mxu1 %vm1669_vm1, %v1670_v8  ;;  %v931_v8 = vld [vmem:[%s2146_s8 + $0x68] sm:$0xff] (!%p1308_p1) }
 0x39a   : > { %1430 = vmatprep.subr.bf16.mxu1 %v1668_v5  ;;  %v1441_v5 = vpack.c.bf16 (!%p1308_p1), %v929_v2, %v927_v1  ;;  %v1445_v11 = vpack.c.bf16 (!%p1308_p1), %v933_v9, %v931_v8  ;;  %v1058_v2 = vld [vmem:[%s2148_s10 + $0xe0] sm:$0xff] (!%p1308_p1)  ;;  %v1060_v8 = vld [vmem:[%s2148_s10 + $0xf0] sm:$0xff] (!%p1308_p1)  ;;  %v1061_v9 = vld [vmem:[%s2148_s10 + $0xf8] sm:$0xff] (!%p1308_p1) }
 0x39d   : > { %1432 = vmatpush3.bf16.msra.mxu1 %v1431_v40 }
 0x39e   : > { %1450 = vmatprep.subr.bf16.mxu1 (!%p1308_p1), %v1449_v18 }
 0x46b   : > { %v788_v41 = vpop.f32.mrb[2].mxu1 }
 0x46c   : > { %v1403_v42 = vpop.f32.mrb[3].mxu1  ;;  %1413 = vmatmul.mubr.msk.f32.vlgmr.msra.gmra.mrb[4].mxu1 %vm629_vm3, %v788_v41 }
 0x46d   : > { %1452 = vmatpush3.bf16.msra.mxu1 (!%p1308_p1), %v1451_v22 }
 0x46e   : > { %1454 = vmatprep.subr.bf16.mxu1 (!%p1308_p1), %v1453_v23 }
 0x471   : > { %1456 = vmatpush3.bf16.msra.mxu1 (!%p1308_p1), %v1455_v28 }
 0x472   : > { %1458 = vmatprep.subr.bf16.mxu1 (!%p1308_p1), %v1457_v29 }
 0x475   : > { %1460 = vmatpush3.bf16.msra.mxu1 (!%p1308_p1), %v1459_v32 }
 0x53c   : > { %875 = sbr.rel (%p1308_p1) target bundleno = 2155 (0x86b), region = 84 }
 0x53f   : > { %v866_v44 = vpop.f32.mrb[4].mxu1 }
 0x540   : > { %v870_v45 = vadd.f32 %v866_v44, %v792_v43  ;;  %v1414_v46 = vpop.f32.mrb[5].mxu1  ;;  %v1310_v43 = vld [vmem:[%s2144_s6] ss:$0 sm:$0xff] (!%p1308_p1) }
 0x542   : > { %871 = vst.msk [vmem:[#allocation2] sm:$0xff] %vm551_vm2, %v870_v45  ;;  %v1311_v45 = vld [vmem:[%s2145_s7] ss:$0 sm:$0xff] (!%p1308_p1) }
 0x549   : > { %v876_v47 = vld [vmem:[#allocation2] sm:$0xff] }
 0x54a   : > { %v884_v49 = vadd.f32 %v1309_v48, %v876_v47  ;;  %v1052_v48 = vld [vmem:[%s2148_s10 + $0xb0] sm:$0xff] }
 0x54c   : > { %v1903_v50 = vadd.f32 %v884_v49, %v1843_v0  ;;  %v924_v0 = vld [vmem:[%s2146_s8 + $0x30] sm:$0xff]  ;;  %v1053_v49 = vld [vmem:[%s2148_s10 + $0xb8] sm:$0xff] }
 0x54d   : > { %v1439_v4 = vpack.c.bf16 %v924_v0, %v922_v62  ;;  %v1469_v62 = vpack.c.bf16 %v1057_v61, %v1056_v60  ;;  %v1041_v0 = vld [vmem:[%s2148_s10 + $0x58] sm:$0xff] }
 0x54e   : > { %v888_v51 = vsel %vm551_vm2, %v1903_v50, 0.0  ;;  %v891_v52 = vmul.f32 %v1903_v50, %v1903_v50  ;;  %v1471_v1 = vpack.c.bf16 %v1041_v0, %v1040_v63 }
 0x54f   : > { %889 = vadd.xlane.f32.xlu0 %v888_v51  ;;  %1440 = vmatpush1.bf16.msra.mxu0 %v1439_v4  ;;  %v1036_v51 = vld [vmem:[%s2148_s10 + $0x30] sm:$0xff]  ;;  %v1473_v4 = vpack.c.bf16 %v1059_v3, %v1058_v2 }
 0x550   : > { %v892_v53 = vsel %vm551_vm2, %v891_v52, 0.0  ;;  %1442 = vmatprep.subr.bf16.mxu0 %v1441_v5  ;;  %v1037_v52 = vld [vmem:[%s2148_s10 + $0x38] sm:$0xff]  ;;  %v1042_v5 = vld [vmem:[%s2148_s10 + $0x60] sm:$0xff] }
 0x551   : > { %v1475_v7 = vpack.c.bf16 %v1043_v6, %v1042_v5 }
 0x553   : > { %893 = vadd.xlane.f32.xlu0 %v892_v53  ;;  %1444 = vmatpush1.bf16.msra.mxu0 %v1443_v10  ;;  %v1463_v53 = vpack.c.bf16 %v1037_v52, %v1036_v51  ;;  %v1477_v10 = vpack.c.bf16 %v1061_v9, %v1060_v8 }
 0x554   : > { %1446 = vmatprep.subr.bf16.mxu0 %v1445_v11  ;;  %v1044_v11 = vld [vmem:[%s2148_s10 + $0x70] sm:$0xff] }
 0x555   : > { %v1479_v13 = vpack.c.bf16 %v1045_v12, %v1044_v11 }
 0x557   : > { %1448 = vmatpush1.bf16.msra.mxu0 %v1447_v14  ;;  %v936_v14 = vlaneseq }
 0x559   : > { %v937_v15 = vshrl.u32 %v936_v14, 7 }
 0x55b   : > { %v938_v16 = vsub.s32 0, %v937_v15  ;;  %v942_v18 = vsub.s32 1, %v937_v15 }
 0x55d   : > { %v939_v19 = vrot.slane %v934_v17, %v938_v16  ;;  %v943_v20 = vrot.slane %v934_v17, %v942_v18 }
 0x5dc   : > { %v890_v33 = vpop.xlane.xlu0 %889 }
 0x5dd   : > { %v895_v34 = vmul.f32 0.015625, %v890_v33 }
 0x5df   : > { %v897_v36 = vmul.f32 %v895_v34, %v895_v34  ;;  %v900_v41 = vsub.f32 %v1903_v50, %v895_v34  ;;  %v1461_v50 = vpack.c.bf16 %v1053_v49, %v1052_v48 }
 0x5e0   : > { %v894_v35 = vpop.xlane.xlu0 %893 }
 0x5e1   : > { %v896_v37 = vmul.f32 0.015625, %v894_v35  ;;  %1462 = vmatprep.subr.bf16.mxu1 %v1461_v50 }
 0x5e2   : > { %1464 = vmatpush3.bf16.msra.mxu1 %v1463_v53 }
 0x5e3   : > { %v898_v38 = vsub.f32 %v896_v37, %v897_v36  ;;  %1466 = vmatprep.subr.bf16.mxu1 %v1465_v56  ;;  %v1313_v36 = vld [vmem:[%s2149_s11] ss:$0 sm:$0xff] }
 0x5e4   : > { %v1315_v56 = vld [vmem:[%s2183_s15] ss:$0 sm:$0xff] }
 0x5e5   : > { %v899_v39 = vmax.f32 %v898_v38, 0.0 }
 0x5e6   : > { %1468 = vmatpush3.bf16.msra.mxu1 %v1467_v59 }
 0x5e7   : > { %v901_v40 = vadd.f32 1e-12, %v899_v39  ;;  %1470 = vmatprep.subr.bf16.mxu1 %v1469_v62 }
 0x5e9   : > { %1563 = vrsqrt.f32 %v901_v40 }
 0x5ea   : > { %1472 = vmatpush3.bf16.msra.mxu1 %v1471_v1 }
 0x5eb   : > { %1474 = vmatprep.subr.bf16.mxu1 %v1473_v4 }
 0x5ee   : > { %1476 = vmatpush3.bf16.msra.mxu1 %v1475_v7 }
 0x5ef   : > { %1478 = vmatprep.subr.bf16.mxu1 %v1477_v10 }
 0x5f2   : > { %1480 = vmatpush3.bf16.msra.mxu1 %v1479_v13 }
 0x5f3   : > { %v1564_v42 = vpop.eup %1563 }
 0x5f4   : > { %v903_v44 = vmul.f32 %v1564_v42, %v900_v41 }
 0x5f6   : > { %v910_v46 = vmul.f32 %v1310_v43, %v903_v44 }
 0x5f8   : > { %v2001_v47 = vadd.f32 %v1311_v45, %v910_v46 }
 0x5fa   : > { %1312 = vmatmul.mubr.msk.f32.vlgmr.msra.gmra.mrb[0].mxu0 %vm551_vm2, %v2001_v47 }
 0x6cd   : > { %v1015_v21 = vpop.f32.mrb[0].mxu0 }
 0x6ce   : > { %v1016_v22 = vadd.f32 %v1015_v21, %v939_v19  ;;  %v1017_v23 = vpop.f32.mrb[1].mxu0 }
 0x6cf   : > { %v1018_v24 = vadd.f32 %v1017_v23, %v943_v20 }
 0x6d0   : > { %v1022_v25 = vmul.f32 0.70710677, %v1016_v22  ;;  %v1020_v32 = vmul.f32 0.5, %v1016_v22 }
 0x6d1   : > { %v1023_v26 = vmul.f32 0.70710677, %v1018_v24  ;;  %v1021_v30 = vmul.f32 0.5, %v1018_v24 }
 0x6d2   : > { %1565 = verf.f32 %v1022_v25 }
 0x6d3   : > { %1567 = verf.f32 %v1023_v26 }
 0x6dc   : > { %v1566_v27 = vpop.eup %1565 }
 0x6dd   : > { %v1568_v28 = vpop.eup %1567  ;;  %v1026_v29 = vadd.f32 1.0, %v1566_v27 }
 0x6de   : > { %v1027_v31 = vadd.f32 1.0, %v1568_v28 }
 0x6df   : > { %v1028_v34 = vmul.f32 %v1026_v29, %v1020_v32 }
 0x6e0   : > { %v1029_v33 = vmul.f32 %v1027_v31, %v1021_v30 }
 0x6e2   : > { %1133 = vmatprep.mubr.f32.mxu1 %v1029_v33 }
 0x6e3   : > { %1134 = vmatmul.mubr.f32.vlgmr.msra.gmra.mrb[0].mxu1 %v1028_v34 }
 0x7b6   : > { %v1372_v35 = vpop.f32.mrb[0].mxu1 }
 0x7b7   : > { %v1373_v37 = vpop.f32.mrb[1].mxu1 }
 0x7b8   : > { %v1374_v38 = vadd.f32 %v1373_v37, %v1372_v35 }
 0x7ba   : > { %v1136_v39 = vadd.f32 %v1374_v38, %v1313_v36 }
 0x7bc   : > { %v1139_v40 = vadd.f32 %v1136_v39, %v2001_v47  ;;  %v1314_v47 = vld [vmem:[%s2150_s12] ss:$0 sm:$0xff] }
 0x7be   : > { %v1142_v41 = vsel %vm551_vm2, %v1139_v40, 0.0  ;;  %v1145_v42 = vmul.f32 %v1139_v40, %v1139_v40 }
 0x7bf   : > { %1143 = vadd.xlane.f32.xlu1 %v1142_v41 }
 0x7c0   : > { %v1146_v43 = vsel %vm551_vm2, %v1145_v42, 0.0 }
 0x7c3   : > { %1147 = vadd.xlane.f32.xlu1 %v1146_v43 }
 0x84c   : > { %v1144_v44 = vpop.xlane.xlu1 %1143 }
 0x84d   : > { %v1149_v45 = vmul.f32 0.015625, %v1144_v44 }
 0x84f   : > { %v1151_v48 = vmul.f32 %v1149_v45, %v1149_v45  ;;  %v1154_v53 = vsub.f32 %v1139_v40, %v1149_v45 }
 0x850   : > { %v1148_v46 = vpop.xlane.xlu1 %1147 }
 0x851   : > { %v1150_v49 = vmul.f32 0.015625, %v1148_v46 }
 0x853   : > { %v1152_v50 = vsub.f32 %v1150_v49, %v1151_v48 }
 0x855   : > { %v1153_v51 = vmax.f32 %v1152_v50, 0.0 }
 0x857   : > { %v1155_v52 = vadd.f32 1e-12, %v1153_v51 }
 0x859   : > { %1569 = vrsqrt.f32 %v1155_v52 }
 0x863   : > { %v1570_v54 = vpop.eup %1569 }
 0x864   : > { %v1157_v55 = vmul.f32 %v1570_v54, %v1154_v53 }
 0x866   : > { %v1164_v57 = vmul.f32 %v1314_v47, %v1157_v55 }
 0x868   : > { %v1171_v58 = vadd.f32 %v1315_v56, %v1164_v57 }
 0x86a   : > { %1172 = vst.msk [vmem:[%s511_s19] sm:$0xff] %vm551_vm2, %v1171_v58 }
 0x86b PF: > { %s2184_s17 = sld [smem:[#allocation9_spill]]  ;;  %s2187_s21 = sld [smem:[#allocation19_spill]] }
 0x86c   : > { %s2185_s20 = sld [smem:[#allocation7_spill]]  ;;  %s1187_s27 = sshll.u32 %s511_s19, 4  ;;  %s1188_s27 = int_to_ptr.vmem [resolvable:$true] %s1187_s27 }
 0x86d   : > { %s1571_s13 = scalar_lea.vmem %s1188_s27, 128  ;;  %s1674_s14 = smov [#allocation3]  }
 0x86e   : > { %p1572_p2 = scmp.ne.s32.totalorder %s1188_s27, %s1571_s13  ;;  %s1575_s29 = sshll.u32 %s1674_s14, 4  ;;  %s1576_s29 = int_to_ptr.vmem [resolvable:$false] %s1575_s29 }
 0x86f   : > { %s1577_s30 = scalar_lea.vmem %s1576_s29, 256  ;;  %p1578_p6 = scmp.lt.s32.totalorder %s1188_s27, %s1576_s29 }
 0x870   : > { %p1573_p4 = pnand %p1572_p2, %p1799_p3  ;;  %p1579_p7 = scmp.lt.s32.totalorder %s1577_s30, %s1571_s13 }
 0x871   : > { %s1317_s16 = sshll.u32 %s2184_s17, 7 }
 0x872   : > { %s2087_s22 = scalar_lea.hbm %s2187_s21, %s1317_s16  ;;  %s2188_s28 = sand.u32 1, %s2185_s20  }
 0x873   : > { %s1174_s18 = scalar_lea.sflag [#allocation4], %s2188_s28  ;;  %p1574_p5 = pneg %p1573_p4 }
 0x874   : > { %p1580_p8 = por %p1579_p7, %p1578_p6 }
 0x876   : > { %p1581_p10 = pnand %p1580_p8, %p1574_p5 }
 0x878   : > { %1584 = shalt.err (!%p1581_p10)
}
 0x879   : > { %s1585_s23 = scalar_lea.hbm %s2087_s22, 128  ;;  %s1589_s17 = scalar_lea.hbm %s2187_s21, 256 }
 0x87a   : > { %p1586_p11 = scmp.ne.s32.totalorder %s2087_s22, %s1585_s23  ;;  %p1590_p0 = scmp.lt.u32.totalorder %s2087_s22, %s2187_s21 }
 0x87b   : > { %p1591_p1 = scmp.lt.u32.totalorder %s1589_s17, %s1585_s23  ;;  %p1593_p4 = scmp.lt.u32.totalorder %s1585_s23, %s2087_s22 }
 0x87c   : > { %p1587_p12 = pnand %p1586_p11, %p1799_p3 }
 0x87d   : > { %p1592_p2 = por %p1591_p1, %p1590_p0 }
 0x87e   : > { %p1588_p13 = pneg %p1587_p12 }
 0x87f   : > { %p1594_p5 = por %p1593_p4, %p1592_p2 }
 0x881   : > { %p1595_p6 = pnand %p1594_p5, %p1588_p13 }
 0x883   : > { %1598 = shalt.err (!%p1595_p6)
}
 0x884   : > { %1481 = dma.vmem_to_hbm [thread:$0]  (%p1799_p3), %s1188_s27, 128, %s2087_s22, %s1174_s18  }
 0x885 PF: > { %s2189_s25 = sld [smem:[#allocation12_spill]]  ;;  %s2190_s26 = sld [smem:[#allocation6_spill]] }
 0x88b   : > { %p1487_p7 = scmp.ge.s32.totalorder %s2189_s25, 2  ;;  %s1199_s13 = sand.u32 1, %s2190_s26  }
 0x88c   : > { %s1200_s14 = scalar_lea.sflag [#allocation4], %s1199_s13 }
 0x88d   : > { %p1484_p8 = pnand %p1487_p7, %p1809_p9 }
 0x88f   : > { %1632 = dma.done.wait (!%p1484_p8), %s1200_s14, 128  }
 0x890   : > { %1634 = vsyncadd (!%p1484_p8), %s1200_s14, 4294967168  ;;  %s27_s20 = sadd.s32 1, %s2189_s25   ;;  %s2192_s29 = sld [smem:[#allocation7_spill]] }
 0x891   : > { %p24_p10 = scmp.ge.s32.totalorder %s27_s20, 6   ;;  %s2193_s30 = sld [smem:[#allocation8_spill]] }
 0x892   : > { %s2194_s15 = sld [smem:[#allocation17_spill]]  ;;  %s2195_s16 = sld [smem:[#allocation10_spill]] }
 0x893   : > { %s2196_s17 = sld [smem:[#allocation11_spill]]  ;;  %s2197_s18 = sld [smem:[#allocation13_spill]] }
 0x894   : > { %s2198_s19 = sld [smem:[#allocation15_spill]]  ;;  %26 = sbr.rel (!%p24_p10) target bundleno = 8 (0x8), region = 128 }
 0x89b   :  { %1205 = vsyncpa [#allocation4], 1 }
 0x89c   :  { %1207 = vsyncpa [#allocation4 + $0x1], 1 }

</bundles_post_ra>
